<compile_context>
chip_gen: v6e
topology: v6e:2x2x1
jax: 0.10.0
libtpu: 0.0.40
codegen_flags: <defaults>
</compile_context>

<pallas_src>
import functools

import jax
import jax.numpy as jnp
from jax import lax
from jax.experimental import pallas as pl
from jax.experimental.pallas import tpu as pltpu


def _sample_layer_kernel(x_ref, sel_ref, w_ref, b_ref, o_ref, *, slab, pair_w, n_cand):
    # x_ref  : (1, C, th, L)       VMEM, input dtype; L = 2*k*W packed image rows
    # sel_ref: (Ls, n_cand*Q)      VMEM, 0/1 selection matrix (exact pass-through)
    # w_ref  : (C_out, C)          SMEM f32, conv weight with BN scale folded in
    # b_ref  : (C_out,)            SMEM f32, folded BN shift
    # o_ref  : (1, C_out, th, Q)   VMEM, packed pooled layout (Q = k*Wp)
    C = x_ref.shape[1]
    C_out = o_ref.shape[1]
    th = x_ref.shape[2]
    Q = o_ref.shape[3]

    def process(r0):
        sel = sel_ref[...]
        # --- MaxPool2d(2): selection matmul (MXU) + elementwise max (VPU) ---
        pooled = []
        for c in range(C):
            xc = x_ref[0, c, pl.ds(r0, slab), :]                  # (slab, L)
            if pair_w:
                # k == 1 layout: [row 2h | row 2h+1]; H-direction max first.
                xc = jnp.maximum(xc[:, :pair_w], xc[:, pair_w:])  # (slab, W)
            z = jnp.dot(xc, sel, preferred_element_type=jnp.float32)
            m = z[:, :Q]
            for g in range(1, n_cand):
                m = jnp.maximum(m, z[:, g * Q:(g + 1) * Q])
            pooled.append(m)                                      # (slab, Q) f32

        # --- 1x1 conv (BN scale folded) + shift + ReLU: scalar-broadcast FMAs ---
        # TODO(synk): replace with an MXU matmul over C once channel counts are large.
        for o in range(C_out):
            acc = pooled[0] * w_ref[o, 0]
            for c in range(1, C):
                acc = acc + pooled[c] * w_ref[o, c]
            acc = acc + b_ref[o]
            o_ref[0, o, pl.ds(r0, slab), :] = jnp.maximum(acc, 0.0).astype(o_ref.dtype)

    n_slabs = th // slab
    if n_slabs == 1:
        process(0)
    else:
        def body(i, carry):
            process(pl.multiple_of(i * slab, slab))
            return carry
        lax.fori_loop(0, n_slabs, body, 0)


def _pick_pack(hp, wp):
    """Smallest divisor k of hp such that the packed pooled width k*wp reaches 128."""
    target = -(-128 // wp)
    for d in range(1, hp + 1):
        if hp % d == 0 and d >= target:
            return d
    return hp


def _pick_row_tile(hr, per_row_bytes, fixed_bytes, budget_bytes):
    """Largest row tile along the packed-row axis whose buffers fit the VMEM budget."""
    if hr <= 8 or hr % 8 != 0:
        return hr          # block dim must equal the full dim when it is not 8-aligned
    t = hr
    while t >= 16:
        if hr % t == 0 and t % 8 == 0 and fixed_bytes + t * per_row_bytes <= budget_bytes:
            return t
        t -= 8
    return 8


def _pick_slab(th, q):
    """Inner row-slab size: bounds the vreg live set of the fused pool+conv body."""
    cap = 16 if q <= 256 else 8
    if th <= cap:
        return th
    for s in range(cap, 0, -1):
        if th % s == 0:
            return s
    return th


def sample_layer_forward(x_nchw, conv_w, bn_gamma, bn_beta, bn_mean, bn_var, eps=1e-5):
    """SampleLayer(down=True): (N, C, H, W) -> (N, 2C, H//2, W//2)."""
    N, C, H, W = x_nchw.shape
    C_out = conv_w.shape[0]
    # TODO(synk): PyTorch MaxPool2d(2) silently floors odd spatial dims; this kernel
    # requires even H, W (pad in the caller if odd inputs are possible).
    assert H % 2 == 0 and W % 2 == 0, "H and W must be even for MaxPool2d(2)"
    Hp, Wp = H // 2, W // 2
    dt = x_nchw.dtype
    itemsize = jnp.dtype(dt).itemsize

    # Fold inference-mode BatchNorm into the conv weight + a per-channel shift.
    # TODO(synk): training-mode (batch statistics) BatchNorm is not implemented.
    inv_std = 1.0 / jnp.sqrt(bn_var.astype(jnp.float32) + eps)
    scale = bn_gamma.astype(jnp.float32) * inv_std                       # (C_out,)
    w_s = conv_w.reshape(C_out, C).astype(jnp.float32) * scale[:, None]  # (C_out, C)
    shift = bn_beta.astype(jnp.float32) - bn_mean.astype(jnp.float32) * scale

    # Lane packing: k row-pairs per lane-row so the pooled width Q = k*Wp is dense.
    k = _pick_pack(Hp, Wp)
    Hr = Hp // k
    L = 2 * k * W
    Q = k * Wp

    # Free, contiguous reshape of NCHW; NO astype -- keep the native dtype in HBM.
    x_r = x_nchw.reshape(N, C, Hr, L)

    # 0/1 selection matrix (exact pass-through on the MXU; cast to the input dtype).
    if k == 1:
        # Row-pair max is an elementwise max of the two lane halves; sel only
        # compacts even/odd columns.
        w_idx = jnp.arange(W, dtype=jnp.int32)
        tgt = (w_idx % 2) * Wp + w_idx // 2
        sel = (tgt[:, None] == jnp.arange(2 * Wp, dtype=jnp.int32)[None, :]).astype(dt)
        pair_w, n_cand = W, 2                                            # sel: (W, 2*Wp)
    else:
        # Lane j = (pair p, row u, col w) -> candidate 2u + w%2, position p*Wp + w//2.
        j = jnp.arange(L, dtype=jnp.int32)
        p = j // (2 * W)
        u = (j % (2 * W)) // W
        wc = j % W
        tgt = (2 * u + wc % 2) * Q + p * Wp + wc // 2
        sel = (tgt[:, None] == jnp.arange(4 * Q, dtype=jnp.int32)[None, :]).astype(dt)
        pair_w, n_cand = 0, 4                                            # sel: (L, L)
    # TODO(synk): for very large W (>~2048) the selection matrix outgrows VMEM; a
    # lane-shuffle based column compaction would be needed there.

    # Row tiling along the packed-row axis; budget accounts for double-buffered
    # input/output blocks AND the double-buffered sel.
    per_row = 2 * itemsize * (C * L + C_out * Q)
    fixed = 2 * itemsize * sel.shape[0] * sel.shape[1]
    th = _pick_row_tile(Hr, per_row, fixed, budget_bytes=24 * 1024 * 1024)
    # v7x megacore: keep at least 2 parallel grid steps when the shape allows it.
    if N * (Hr // th) < 2 and th % 16 == 0:
        th //= 2
    slab = _pick_slab(th, Q)
    grid = (N, Hr // th)

    kernel = functools.partial(_sample_layer_kernel,
                               slab=slab, pair_w=pair_w, n_cand=n_cand)
    out = pl.pallas_call(
        kernel,
        out_shape=jax.ShapeDtypeStruct((N, C_out, Hr, Q), dt),
        grid_spec=pltpu.PrefetchScalarGridSpec(
            num_scalar_prefetch=0,
            grid=grid,
            in_specs=[
                pl.BlockSpec((1, C, th, L), lambda n, t: (n, 0, t, 0)),
                pl.BlockSpec(sel.shape, lambda n, t: (0, 0)),
                pl.BlockSpec(memory_space=pltpu.MemorySpace.SMEM),
                pl.BlockSpec(memory_space=pltpu.MemorySpace.SMEM),
            ],
            out_specs=pl.BlockSpec((1, C_out, th, Q), lambda n, t: (n, 0, t, 0)),
        ),
        compiler_params=pltpu.CompilerParams(
            dimension_semantics=("parallel", "parallel"),
            vmem_limit_bytes=40 * 1024 * 1024),
    )(x_r, sel, w_s, shift)

    # Free reshape of the packed pooled layout back to NCHW.
    return out.reshape(N, C_out, Hp, Wp)


def _reference_forward(x_nchw, conv_w, bn_gamma, bn_beta, bn_mean, bn_var, eps=1e-5):
    """Pure-JAX reference of the same forward (for sanity checking)."""
    N, C, H, W = x_nchw.shape
    C_out = conv_w.shape[0]
    pooled = jnp.maximum(
        jnp.maximum(x_nchw[:, :, 0::2, 0::2], x_nchw[:, :, 0::2, 1::2]),
        jnp.maximum(x_nchw[:, :, 1::2, 0::2], x_nchw[:, :, 1::2, 1::2]))
    y = jnp.einsum("nchw,oc->nohw", pooled, conv_w.reshape(C_out, C))
    inv_std = 1.0 / jnp.sqrt(bn_var + eps)
    y = (y - bn_mean[None, :, None, None]) * (bn_gamma * inv_std)[None, :, None, None] \
        + bn_beta[None, :, None, None]
    return jnp.maximum(y, 0.0)


if __name__ == "__main__":
    key = jax.random.PRNGKey(0)
    k_x, k_w, k_g, k_b = jax.random.split(key, 4)

    # SampleLayer(n_features=4, down=True): C_in=4 -> C_out=8
    N, C, H, W = 2, 4, 16, 16
    C_out = C * 2

    x = jax.random.normal(k_x, (N, C, H, W), dtype=jnp.float32)
    conv_w = 0.1 * jax.random.normal(k_w, (C_out, C, 1, 1), dtype=jnp.float32)
    bn_gamma = 1.0 + 0.1 * jax.random.normal(k_g, (C_out,), dtype=jnp.float32)
    bn_beta = 0.1 * jax.random.normal(k_b, (C_out,), dtype=jnp.float32)
    bn_mean = jnp.zeros((C_out,), dtype=jnp.float32)   # PyTorch BN default running_mean
    bn_var = jnp.ones((C_out,), dtype=jnp.float32)     # PyTorch BN default running_var

    fwd = jax.jit(sample_layer_forward)
    out = jax.block_until_ready(fwd(x, conv_w, bn_gamma, bn_beta, bn_mean, bn_var))

    ref = _reference_forward(x, conv_w, bn_gamma, bn_beta, bn_mean, bn_var)
    assert out.shape == (N, C_out, H // 2, W // 2), out.shape
    assert jnp.allclose(out, ref, atol=1e-5, rtol=1e-5), \
        float(jnp.max(jnp.abs(out - ref)))

    print("KERNEL_OK")
</pallas_src>

<mosaic_0001>
module attributes {stable_mosaic.version = 11 : i64} {
  func.func @_sample_layer_kernel(%arg0: i32, %arg1: i32, %arg2: memref<1x4x1x256xf32, #tpu.memory_space<vmem>>, %arg3: memref<256x256xf32, #tpu.memory_space<vmem>>, %arg4: memref<8x4xf32, #tpu.memory_space<smem>>, %arg5: memref<8xf32, #tpu.memory_space<smem>>, %arg6: memref<1x8x1x64xf32, #tpu.memory_space<vmem>>) attributes {dimension_semantics = [#tpu.dimension_semantics<parallel>, #tpu.dimension_semantics<parallel>], iteration_bounds = array<i64: 2, 1>, scalar_prefetch = 0 : i64, scratch_operands = 0 : i64, tpu.core_type = #tpu.core_type<tc>, window_params = [{transform_indices = @transform_0, window_bounds = array<i64: 1, 4, 1, 256>}, {pipeline_mode = #tpu.pipeline_mode<synchronous>, transform_indices = @transform_1, window_bounds = array<i64: 256, 256>}, {transform_indices = @transform_2, window_bounds = array<i64: 8, 4>}, {transform_indices = @transform_3, window_bounds = array<i64: 8>}, {transform_indices = @transform_4, window_bounds = array<i64: 1, 8, 1, 64>}]} {
    %c0 = arith.constant 0 : index
    %c0_0 = arith.constant 0 : index
    %0 = vector.load %arg3[%c0, %c0_0] : memref<256x256xf32, #tpu.memory_space<vmem>>, vector<256x256xf32>
    %c0_1 = arith.constant 0 : index
    %c0_2 = arith.constant 0 : index
    %c0_3 = arith.constant 0 : index
    %c0_4 = arith.constant 0 : index
    %1 = vector.load %arg2[%c0_1, %c0_2, %c0_3, %c0_4] : memref<1x4x1x256xf32, #tpu.memory_space<vmem>>, vector<1x1x1x256xf32>
    %2 = vector.shape_cast %1 : vector<1x1x1x256xf32> to vector<1x256xf32>
    %cst = arith.constant dense<0.000000e+00> : vector<1x256xf32>
    %3 = tpu.matmul %2, %0, %cst {dimension_numbers = #tpu.dot_dimension_numbers<[1], [0], [0], [1], [0, 0, 1, 1], [], []>} : vector<1x256xf32>, vector<256x256xf32>, vector<1x256xf32> -> vector<1x256xf32>
    %4 = vector.extract_strided_slice %3 {offsets = [0, 0], sizes = [1, 64], strides = [1, 1]} : vector<1x256xf32> to vector<1x64xf32>
    %5 = vector.extract_strided_slice %3 {offsets = [0, 64], sizes = [1, 64], strides = [1, 1]} : vector<1x256xf32> to vector<1x64xf32>
    %6 = arith.maximumf %4, %5 : vector<1x64xf32>
    %7 = vector.extract_strided_slice %3 {offsets = [0, 128], sizes = [1, 64], strides = [1, 1]} : vector<1x256xf32> to vector<1x64xf32>
    %8 = arith.maximumf %6, %7 : vector<1x64xf32>
    %9 = vector.extract_strided_slice %3 {offsets = [0, 192], sizes = [1, 64], strides = [1, 1]} : vector<1x256xf32> to vector<1x64xf32>
    %10 = arith.maximumf %8, %9 : vector<1x64xf32>
    %c0_5 = arith.constant 0 : index
    %c1 = arith.constant 1 : index
    %c0_6 = arith.constant 0 : index
    %c0_7 = arith.constant 0 : index
    %11 = vector.load %arg2[%c0_5, %c1, %c0_6, %c0_7] : memref<1x4x1x256xf32, #tpu.memory_space<vmem>>, vector<1x1x1x256xf32>
    %12 = vector.shape_cast %11 : vector<1x1x1x256xf32> to vector<1x256xf32>
    %cst_8 = arith.constant dense<0.000000e+00> : vector<1x256xf32>
    %13 = tpu.matmul %12, %0, %cst_8 {dimension_numbers = #tpu.dot_dimension_numbers<[1], [0], [0], [1], [0, 0, 1, 1], [], []>} : vector<1x256xf32>, vector<256x256xf32>, vector<1x256xf32> -> vector<1x256xf32>
    %14 = vector.extract_strided_slice %13 {offsets = [0, 0], sizes = [1, 64], strides = [1, 1]} : vector<1x256xf32> to vector<1x64xf32>
    %15 = vector.extract_strided_slice %13 {offsets = [0, 64], sizes = [1, 64], strides = [1, 1]} : vector<1x256xf32> to vector<1x64xf32>
    %16 = arith.maximumf %14, %15 : vector<1x64xf32>
    %17 = vector.extract_strided_slice %13 {offsets = [0, 128], sizes = [1, 64], strides = [1, 1]} : vector<1x256xf32> to vector<1x64xf32>
    %18 = arith.maximumf %16, %17 : vector<1x64xf32>
    %19 = vector.extract_strided_slice %13 {offsets = [0, 192], sizes = [1, 64], strides = [1, 1]} : vector<1x256xf32> to vector<1x64xf32>
    %20 = arith.maximumf %18, %19 : vector<1x64xf32>
    %c0_9 = arith.constant 0 : index
    %c2 = arith.constant 2 : index
    %c0_10 = arith.constant 0 : index
    %c0_11 = arith.constant 0 : index
    %21 = vector.load %arg2[%c0_9, %c2, %c0_10, %c0_11] : memref<1x4x1x256xf32, #tpu.memory_space<vmem>>, vector<1x1x1x256xf32>
    %22 = vector.shape_cast %21 : vector<1x1x1x256xf32> to vector<1x256xf32>
    %cst_12 = arith.constant dense<0.000000e+00> : vector<1x256xf32>
    %23 = tpu.matmul %22, %0, %cst_12 {dimension_numbers = #tpu.dot_dimension_numbers<[1], [0], [0], [1], [0, 0, 1, 1], [], []>} : vector<1x256xf32>, vector<256x256xf32>, vector<1x256xf32> -> vector<1x256xf32>
    %24 = vector.extract_strided_slice %23 {offsets = [0, 0], sizes = [1, 64], strides = [1, 1]} : vector<1x256xf32> to vector<1x64xf32>
    %25 = vector.extract_strided_slice %23 {offsets = [0, 64], sizes = [1, 64], strides = [1, 1]} : vector<1x256xf32> to vector<1x64xf32>
    %26 = arith.maximumf %24, %25 : vector<1x64xf32>
    %27 = vector.extract_strided_slice %23 {offsets = [0, 128], sizes = [1, 64], strides = [1, 1]} : vector<1x256xf32> to vector<1x64xf32>
    %28 = arith.maximumf %26, %27 : vector<1x64xf32>
    %29 = vector.extract_strided_slice %23 {offsets = [0, 192], sizes = [1, 64], strides = [1, 1]} : vector<1x256xf32> to vector<1x64xf32>
    %30 = arith.maximumf %28, %29 : vector<1x64xf32>
    %c0_13 = arith.constant 0 : index
    %c3 = arith.constant 3 : index
    %c0_14 = arith.constant 0 : index
    %c0_15 = arith.constant 0 : index
    %31 = vector.load %arg2[%c0_13, %c3, %c0_14, %c0_15] : memref<1x4x1x256xf32, #tpu.memory_space<vmem>>, vector<1x1x1x256xf32>
    %32 = vector.shape_cast %31 : vector<1x1x1x256xf32> to vector<1x256xf32>
    %cst_16 = arith.constant dense<0.000000e+00> : vector<1x256xf32>
    %33 = tpu.matmul %32, %0, %cst_16 {dimension_numbers = #tpu.dot_dimension_numbers<[1], [0], [0], [1], [0, 0, 1, 1], [], []>} : vector<1x256xf32>, vector<256x256xf32>, vector<1x256xf32> -> vector<1x256xf32>
    %34 = vector.extract_strided_slice %33 {offsets = [0, 0], sizes = [1, 64], strides = [1, 1]} : vector<1x256xf32> to vector<1x64xf32>
    %35 = vector.extract_strided_slice %33 {offsets = [0, 64], sizes = [1, 64], strides = [1, 1]} : vector<1x256xf32> to vector<1x64xf32>
    %36 = arith.maximumf %34, %35 : vector<1x64xf32>
    %37 = vector.extract_strided_slice %33 {offsets = [0, 128], sizes = [1, 64], strides = [1, 1]} : vector<1x256xf32> to vector<1x64xf32>
    %38 = arith.maximumf %36, %37 : vector<1x64xf32>
    %39 = vector.extract_strided_slice %33 {offsets = [0, 192], sizes = [1, 64], strides = [1, 1]} : vector<1x256xf32> to vector<1x64xf32>
    %40 = arith.maximumf %38, %39 : vector<1x64xf32>
    %c0_17 = arith.constant 0 : index
    %c0_18 = arith.constant 0 : index
    %41 = memref.load %arg4[%c0_17, %c0_18] : memref<8x4xf32, #tpu.memory_space<smem>>
    %42 = vector.broadcast %41 : f32 to vector<1x64xf32>
    %43 = arith.mulf %10, %42 : vector<1x64xf32>
    %c0_19 = arith.constant 0 : index
    %c1_20 = arith.constant 1 : index
    %44 = memref.load %arg4[%c0_19, %c1_20] : memref<8x4xf32, #tpu.memory_space<smem>>
    %45 = vector.broadcast %44 : f32 to vector<1x64xf32>
    %46 = arith.mulf %20, %45 : vector<1x64xf32>
    %47 = arith.addf %43, %46 : vector<1x64xf32>
    %c0_21 = arith.constant 0 : index
    %c2_22 = arith.constant 2 : index
    %48 = memref.load %arg4[%c0_21, %c2_22] : memref<8x4xf32, #tpu.memory_space<smem>>
    %49 = vector.broadcast %48 : f32 to vector<1x64xf32>
    %50 = arith.mulf %30, %49 : vector<1x64xf32>
    %51 = arith.addf %47, %50 : vector<1x64xf32>
    %c0_23 = arith.constant 0 : index
    %c3_24 = arith.constant 3 : index
    %52 = memref.load %arg4[%c0_23, %c3_24] : memref<8x4xf32, #tpu.memory_space<smem>>
    %53 = vector.broadcast %52 : f32 to vector<1x64xf32>
    %54 = arith.mulf %40, %53 : vector<1x64xf32>
    %55 = arith.addf %51, %54 : vector<1x64xf32>
    %c0_25 = arith.constant 0 : index
    %56 = memref.load %arg5[%c0_25] : memref<8xf32, #tpu.memory_space<smem>>
    %57 = vector.broadcast %56 : f32 to vector<1x64xf32>
    %58 = arith.addf %55, %57 : vector<1x64xf32>
    %cst_26 = arith.constant 0.000000e+00 : f32
    %59 = vector.broadcast %cst_26 : f32 to vector<1x64xf32>
    %60 = arith.maximumf %58, %59 : vector<1x64xf32>
    %c0_27 = arith.constant 0 : index
    %c0_28 = arith.constant 0 : index
    %c0_29 = arith.constant 0 : index
    %c0_30 = arith.constant 0 : index
    %61 = vector.load %arg6[%c0_27, %c0_28, %c0_29, %c0_30] : memref<1x8x1x64xf32, #tpu.memory_space<vmem>>, vector<1x1x1x64xf32>
    %62 = vector.shape_cast %61 : vector<1x1x1x64xf32> to vector<1x64xf32>
    %63 = vector.shape_cast %60 : vector<1x64xf32> to vector<1x1x1x64xf32>
    tpu.vector_store %arg6[%c0_27, %c0_28, %c0_29, %c0_30], %63 {strides = array<i32>} : memref<1x8x1x64xf32, #tpu.memory_space<vmem>>, vector<1x1x1x64xf32>,
    %c1_31 = arith.constant 1 : index
    %c0_32 = arith.constant 0 : index
    %64 = memref.load %arg4[%c1_31, %c0_32] : memref<8x4xf32, #tpu.memory_space<smem>>
    %65 = vector.broadcast %64 : f32 to vector<1x64xf32>
    %66 = arith.mulf %10, %65 : vector<1x64xf32>
    %c1_33 = arith.constant 1 : index
    %c1_34 = arith.constant 1 : index
    %67 = memref.load %arg4[%c1_33, %c1_34] : memref<8x4xf32, #tpu.memory_space<smem>>
    %68 = vector.broadcast %67 : f32 to vector<1x64xf32>
    %69 = arith.mulf %20, %68 : vector<1x64xf32>
    %70 = arith.addf %66, %69 : vector<1x64xf32>
    %c1_35 = arith.constant 1 : index
    %c2_36 = arith.constant 2 : index
    %71 = memref.load %arg4[%c1_35, %c2_36] : memref<8x4xf32, #tpu.memory_space<smem>>
    %72 = vector.broadcast %71 : f32 to vector<1x64xf32>
    %73 = arith.mulf %30, %72 : vector<1x64xf32>
    %74 = arith.addf %70, %73 : vector<1x64xf32>
    %c1_37 = arith.constant 1 : index
    %c3_38 = arith.constant 3 : index
    %75 = memref.load %arg4[%c1_37, %c3_38] : memref<8x4xf32, #tpu.memory_space<smem>>
    %76 = vector.broadcast %75 : f32 to vector<1x64xf32>
    %77 = arith.mulf %40, %76 : vector<1x64xf32>
    %78 = arith.addf %74, %77 : vector<1x64xf32>
    %c1_39 = arith.constant 1 : index
    %79 = memref.load %arg5[%c1_39] : memref<8xf32, #tpu.memory_space<smem>>
    %80 = vector.broadcast %79 : f32 to vector<1x64xf32>
    %81 = arith.addf %78, %80 : vector<1x64xf32>
    %cst_40 = arith.constant 0.000000e+00 : f32
    %82 = vector.broadcast %cst_40 : f32 to vector<1x64xf32>
    %83 = arith.maximumf %81, %82 : vector<1x64xf32>
    %c0_41 = arith.constant 0 : index
    %c1_42 = arith.constant 1 : index
    %c0_43 = arith.constant 0 : index
    %c0_44 = arith.constant 0 : index
    %84 = vector.load %arg6[%c0_41, %c1_42, %c0_43, %c0_44] : memref<1x8x1x64xf32, #tpu.memory_space<vmem>>, vector<1x1x1x64xf32>
    %85 = vector.shape_cast %84 : vector<1x1x1x64xf32> to vector<1x64xf32>
    %86 = vector.shape_cast %83 : vector<1x64xf32> to vector<1x1x1x64xf32>
    tpu.vector_store %arg6[%c0_41, %c1_42, %c0_43, %c0_44], %86 {strides = array<i32>} : memref<1x8x1x64xf32, #tpu.memory_space<vmem>>, vector<1x1x1x64xf32>,
    %c2_45 = arith.constant 2 : index
    %c0_46 = arith.constant 0 : index
    %87 = memref.load %arg4[%c2_45, %c0_46] : memref<8x4xf32, #tpu.memory_space<smem>>
    %88 = vector.broadcast %87 : f32 to vector<1x64xf32>
    %89 = arith.mulf %10, %88 : vector<1x64xf32>
    %c2_47 = arith.constant 2 : index
    %c1_48 = arith.constant 1 : index
    %90 = memref.load %arg4[%c2_47, %c1_48] : memref<8x4xf32, #tpu.memory_space<smem>>
    %91 = vector.broadcast %90 : f32 to vector<1x64xf32>
    %92 = arith.mulf %20, %91 : vector<1x64xf32>
    %93 = arith.addf %89, %92 : vector<1x64xf32>
    %c2_49 = arith.constant 2 : index
    %c2_50 = arith.constant 2 : index
    %94 = memref.load %arg4[%c2_49, %c2_50] : memref<8x4xf32, #tpu.memory_space<smem>>
    %95 = vector.broadcast %94 : f32 to vector<1x64xf32>
    %96 = arith.mulf %30, %95 : vector<1x64xf32>
    %97 = arith.addf %93, %96 : vector<1x64xf32>
    %c2_51 = arith.constant 2 : index
    %c3_52 = arith.constant 3 : index
    %98 = memref.load %arg4[%c2_51, %c3_52] : memref<8x4xf32, #tpu.memory_space<smem>>
    %99 = vector.broadcast %98 : f32 to vector<1x64xf32>
    %100 = arith.mulf %40, %99 : vector<1x64xf32>
    %101 = arith.addf %97, %100 : vector<1x64xf32>
    %c2_53 = arith.constant 2 : index
    %102 = memref.load %arg5[%c2_53] : memref<8xf32, #tpu.memory_space<smem>>
    %103 = vector.broadcast %102 : f32 to vector<1x64xf32>
    %104 = arith.addf %101, %103 : vector<1x64xf32>
    %cst_54 = arith.constant 0.000000e+00 : f32
    %105 = vector.broadcast %cst_54 : f32 to vector<1x64xf32>
    %106 = arith.maximumf %104, %105 : vector<1x64xf32>
    %c0_55 = arith.constant 0 : index
    %c2_56 = arith.constant 2 : index
    %c0_57 = arith.constant 0 : index
    %c0_58 = arith.constant 0 : index
    %107 = vector.load %arg6[%c0_55, %c2_56, %c0_57, %c0_58] : memref<1x8x1x64xf32, #tpu.memory_space<vmem>>, vector<1x1x1x64xf32>
    %108 = vector.shape_cast %107 : vector<1x1x1x64xf32> to vector<1x64xf32>
    %109 = vector.shape_cast %106 : vector<1x64xf32> to vector<1x1x1x64xf32>
    tpu.vector_store %arg6[%c0_55, %c2_56, %c0_57, %c0_58], %109 {strides = array<i32>} : memref<1x8x1x64xf32, #tpu.memory_space<vmem>>, vector<1x1x1x64xf32>,
    %c3_59 = arith.constant 3 : index
    %c0_60 = arith.constant 0 : index
    %110 = memref.load %arg4[%c3_59, %c0_60] : memref<8x4xf32, #tpu.memory_space<smem>>
    %111 = vector.broadcast %110 : f32 to vector<1x64xf32>
    %112 = arith.mulf %10, %111 : vector<1x64xf32>
    %c3_61 = arith.constant 3 : index
    %c1_62 = arith.constant 1 : index
    %113 = memref.load %arg4[%c3_61, %c1_62] : memref<8x4xf32, #tpu.memory_space<smem>>
    %114 = vector.broadcast %113 : f32 to vector<1x64xf32>
    %115 = arith.mulf %20, %114 : vector<1x64xf32>
    %116 = arith.addf %112, %115 : vector<1x64xf32>
    %c3_63 = arith.constant 3 : index
    %c2_64 = arith.constant 2 : index
    %117 = memref.load %arg4[%c3_63, %c2_64] : memref<8x4xf32, #tpu.memory_space<smem>>
    %118 = vector.broadcast %117 : f32 to vector<1x64xf32>
    %119 = arith.mulf %30, %118 : vector<1x64xf32>
    %120 = arith.addf %116, %119 : vector<1x64xf32>
    %c3_65 = arith.constant 3 : index
    %c3_66 = arith.constant 3 : index
    %121 = memref.load %arg4[%c3_65, %c3_66] : memref<8x4xf32, #tpu.memory_space<smem>>
    %122 = vector.broadcast %121 : f32 to vector<1x64xf32>
    %123 = arith.mulf %40, %122 : vector<1x64xf32>
    %124 = arith.addf %120, %123 : vector<1x64xf32>
    %c3_67 = arith.constant 3 : index
    %125 = memref.load %arg5[%c3_67] : memref<8xf32, #tpu.memory_space<smem>>
    %126 = vector.broadcast %125 : f32 to vector<1x64xf32>
    %127 = arith.addf %124, %126 : vector<1x64xf32>
    %cst_68 = arith.constant 0.000000e+00 : f32
    %128 = vector.broadcast %cst_68 : f32 to vector<1x64xf32>
    %129 = arith.maximumf %127, %128 : vector<1x64xf32>
    %c0_69 = arith.constant 0 : index
    %c3_70 = arith.constant 3 : index
    %c0_71 = arith.constant 0 : index
    %c0_72 = arith.constant 0 : index
    %130 = vector.load %arg6[%c0_69, %c3_70, %c0_71, %c0_72] : memref<1x8x1x64xf32, #tpu.memory_space<vmem>>, vector<1x1x1x64xf32>
    %131 = vector.shape_cast %130 : vector<1x1x1x64xf32> to vector<1x64xf32>
    %132 = vector.shape_cast %129 : vector<1x64xf32> to vector<1x1x1x64xf32>
    tpu.vector_store %arg6[%c0_69, %c3_70, %c0_71, %c0_72], %132 {strides = array<i32>} : memref<1x8x1x64xf32, #tpu.memory_space<vmem>>, vector<1x1x1x64xf32>,
    %c4 = arith.constant 4 : index
    %c0_73 = arith.constant 0 : index
    %133 = memref.load %arg4[%c4, %c0_73] : memref<8x4xf32, #tpu.memory_space<smem>>
    %134 = vector.broadcast %133 : f32 to vector<1x64xf32>
    %135 = arith.mulf %10, %134 : vector<1x64xf32>
    %c4_74 = arith.constant 4 : index
    %c1_75 = arith.constant 1 : index
    %136 = memref.load %arg4[%c4_74, %c1_75] : memref<8x4xf32, #tpu.memory_space<smem>>
    %137 = vector.broadcast %136 : f32 to vector<1x64xf32>
    %138 = arith.mulf %20, %137 : vector<1x64xf32>
    %139 = arith.addf %135, %138 : vector<1x64xf32>
    %c4_76 = arith.constant 4 : index
    %c2_77 = arith.constant 2 : index
    %140 = memref.load %arg4[%c4_76, %c2_77] : memref<8x4xf32, #tpu.memory_space<smem>>
    %141 = vector.broadcast %140 : f32 to vector<1x64xf32>
    %142 = arith.mulf %30, %141 : vector<1x64xf32>
    %143 = arith.addf %139, %142 : vector<1x64xf32>
    %c4_78 = arith.constant 4 : index
    %c3_79 = arith.constant 3 : index
    %144 = memref.load %arg4[%c4_78, %c3_79] : memref<8x4xf32, #tpu.memory_space<smem>>
    %145 = vector.broadcast %144 : f32 to vector<1x64xf32>
    %146 = arith.mulf %40, %145 : vector<1x64xf32>
    %147 = arith.addf %143, %146 : vector<1x64xf32>
    %c4_80 = arith.constant 4 : index
    %148 = memref.load %arg5[%c4_80] : memref<8xf32, #tpu.memory_space<smem>>
    %149 = vector.broadcast %148 : f32 to vector<1x64xf32>
    %150 = arith.addf %147, %149 : vector<1x64xf32>
    %cst_81 = arith.constant 0.000000e+00 : f32
    %151 = vector.broadcast %cst_81 : f32 to vector<1x64xf32>
    %152 = arith.maximumf %150, %151 : vector<1x64xf32>
    %c0_82 = arith.constant 0 : index
    %c4_83 = arith.constant 4 : index
    %c0_84 = arith.constant 0 : index
    %c0_85 = arith.constant 0 : index
    %153 = vector.load %arg6[%c0_82, %c4_83, %c0_84, %c0_85] : memref<1x8x1x64xf32, #tpu.memory_space<vmem>>, vector<1x1x1x64xf32>
    %154 = vector.shape_cast %153 : vector<1x1x1x64xf32> to vector<1x64xf32>
    %155 = vector.shape_cast %152 : vector<1x64xf32> to vector<1x1x1x64xf32>
    tpu.vector_store %arg6[%c0_82, %c4_83, %c0_84, %c0_85], %155 {strides = array<i32>} : memref<1x8x1x64xf32, #tpu.memory_space<vmem>>, vector<1x1x1x64xf32>,
    %c5 = arith.constant 5 : index
    %c0_86 = arith.constant 0 : index
    %156 = memref.load %arg4[%c5, %c0_86] : memref<8x4xf32, #tpu.memory_space<smem>>
    %157 = vector.broadcast %156 : f32 to vector<1x64xf32>
    %158 = arith.mulf %10, %157 : vector<1x64xf32>
    %c5_87 = arith.constant 5 : index
    %c1_88 = arith.constant 1 : index
    %159 = memref.load %arg4[%c5_87, %c1_88] : memref<8x4xf32, #tpu.memory_space<smem>>
    %160 = vector.broadcast %159 : f32 to vector<1x64xf32>
    %161 = arith.mulf %20, %160 : vector<1x64xf32>
    %162 = arith.addf %158, %161 : vector<1x64xf32>
    %c5_89 = arith.constant 5 : index
    %c2_90 = arith.constant 2 : index
    %163 = memref.load %arg4[%c5_89, %c2_90] : memref<8x4xf32, #tpu.memory_space<smem>>
    %164 = vector.broadcast %163 : f32 to vector<1x64xf32>
    %165 = arith.mulf %30, %164 : vector<1x64xf32>
    %166 = arith.addf %162, %165 : vector<1x64xf32>
    %c5_91 = arith.constant 5 : index
    %c3_92 = arith.constant 3 : index
    %167 = memref.load %arg4[%c5_91, %c3_92] : memref<8x4xf32, #tpu.memory_space<smem>>
    %168 = vector.broadcast %167 : f32 to vector<1x64xf32>
    %169 = arith.mulf %40, %168 : vector<1x64xf32>
    %170 = arith.addf %166, %169 : vector<1x64xf32>
    %c5_93 = arith.constant 5 : index
    %171 = memref.load %arg5[%c5_93] : memref<8xf32, #tpu.memory_space<smem>>
    %172 = vector.broadcast %171 : f32 to vector<1x64xf32>
    %173 = arith.addf %170, %172 : vector<1x64xf32>
    %cst_94 = arith.constant 0.000000e+00 : f32
    %174 = vector.broadcast %cst_94 : f32 to vector<1x64xf32>
    %175 = arith.maximumf %173, %174 : vector<1x64xf32>
    %c0_95 = arith.constant 0 : index
    %c5_96 = arith.constant 5 : index
    %c0_97 = arith.constant 0 : index
    %c0_98 = arith.constant 0 : index
    %176 = vector.load %arg6[%c0_95, %c5_96, %c0_97, %c0_98] : memref<1x8x1x64xf32, #tpu.memory_space<vmem>>, vector<1x1x1x64xf32>
    %177 = vector.shape_cast %176 : vector<1x1x1x64xf32> to vector<1x64xf32>
    %178 = vector.shape_cast %175 : vector<1x64xf32> to vector<1x1x1x64xf32>
    tpu.vector_store %arg6[%c0_95, %c5_96, %c0_97, %c0_98], %178 {strides = array<i32>} : memref<1x8x1x64xf32, #tpu.memory_space<vmem>>, vector<1x1x1x64xf32>,
    %c6 = arith.constant 6 : index
    %c0_99 = arith.constant 0 : index
    %179 = memref.load %arg4[%c6, %c0_99] : memref<8x4xf32, #tpu.memory_space<smem>>
    %180 = vector.broadcast %179 : f32 to vector<1x64xf32>
    %181 = arith.mulf %10, %180 : vector<1x64xf32>
    %c6_100 = arith.constant 6 : index
    %c1_101 = arith.constant 1 : index
    %182 = memref.load %arg4[%c6_100, %c1_101] : memref<8x4xf32, #tpu.memory_space<smem>>
    %183 = vector.broadcast %182 : f32 to vector<1x64xf32>
    %184 = arith.mulf %20, %183 : vector<1x64xf32>
    %185 = arith.addf %181, %184 : vector<1x64xf32>
    %c6_102 = arith.constant 6 : index
    %c2_103 = arith.constant 2 : index
    %186 = memref.load %arg4[%c6_102, %c2_103] : memref<8x4xf32, #tpu.memory_space<smem>>
    %187 = vector.broadcast %186 : f32 to vector<1x64xf32>
    %188 = arith.mulf %30, %187 : vector<1x64xf32>
    %189 = arith.addf %185, %188 : vector<1x64xf32>
    %c6_104 = arith.constant 6 : index
    %c3_105 = arith.constant 3 : index
    %190 = memref.load %arg4[%c6_104, %c3_105] : memref<8x4xf32, #tpu.memory_space<smem>>
    %191 = vector.broadcast %190 : f32 to vector<1x64xf32>
    %192 = arith.mulf %40, %191 : vector<1x64xf32>
    %193 = arith.addf %189, %192 : vector<1x64xf32>
    %c6_106 = arith.constant 6 : index
    %194 = memref.load %arg5[%c6_106] : memref<8xf32, #tpu.memory_space<smem>>
    %195 = vector.broadcast %194 : f32 to vector<1x64xf32>
    %196 = arith.addf %193, %195 : vector<1x64xf32>
    %cst_107 = arith.constant 0.000000e+00 : f32
    %197 = vector.broadcast %cst_107 : f32 to vector<1x64xf32>
    %198 = arith.maximumf %196, %197 : vector<1x64xf32>
    %c0_108 = arith.constant 0 : index
    %c6_109 = arith.constant 6 : index
    %c0_110 = arith.constant 0 : index
    %c0_111 = arith.constant 0 : index
    %199 = vector.load %arg6[%c0_108, %c6_109, %c0_110, %c0_111] : memref<1x8x1x64xf32, #tpu.memory_space<vmem>>, vector<1x1x1x64xf32>
    %200 = vector.shape_cast %199 : vector<1x1x1x64xf32> to vector<1x64xf32>
    %201 = vector.shape_cast %198 : vector<1x64xf32> to vector<1x1x1x64xf32>
    tpu.vector_store %arg6[%c0_108, %c6_109, %c0_110, %c0_111], %201 {strides = array<i32>} : memref<1x8x1x64xf32, #tpu.memory_space<vmem>>, vector<1x1x1x64xf32>,
    %c7 = arith.constant 7 : index
    %c0_112 = arith.constant 0 : index
    %202 = memref.load %arg4[%c7, %c0_112] : memref<8x4xf32, #tpu.memory_space<smem>>
    %203 = vector.broadcast %202 : f32 to vector<1x64xf32>
    %204 = arith.mulf %10, %203 : vector<1x64xf32>
    %c7_113 = arith.constant 7 : index
    %c1_114 = arith.constant 1 : index
    %205 = memref.load %arg4[%c7_113, %c1_114] : memref<8x4xf32, #tpu.memory_space<smem>>
    %206 = vector.broadcast %205 : f32 to vector<1x64xf32>
    %207 = arith.mulf %20, %206 : vector<1x64xf32>
    %208 = arith.addf %204, %207 : vector<1x64xf32>
    %c7_115 = arith.constant 7 : index
    %c2_116 = arith.constant 2 : index
    %209 = memref.load %arg4[%c7_115, %c2_116] : memref<8x4xf32, #tpu.memory_space<smem>>
    %210 = vector.broadcast %209 : f32 to vector<1x64xf32>
    %211 = arith.mulf %30, %210 : vector<1x64xf32>
    %212 = arith.addf %208, %211 : vector<1x64xf32>
    %c7_117 = arith.constant 7 : index
    %c3_118 = arith.constant 3 : index
    %213 = memref.load %arg4[%c7_117, %c3_118] : memref<8x4xf32, #tpu.memory_space<smem>>
    %214 = vector.broadcast %213 : f32 to vector<1x64xf32>
    %215 = arith.mulf %40, %214 : vector<1x64xf32>
    %216 = arith.addf %212, %215 : vector<1x64xf32>
    %c7_119 = arith.constant 7 : index
    %217 = memref.load %arg5[%c7_119] : memref<8xf32, #tpu.memory_space<smem>>
    %218 = vector.broadcast %217 : f32 to vector<1x64xf32>
    %219 = arith.addf %216, %218 : vector<1x64xf32>
    %cst_120 = arith.constant 0.000000e+00 : f32
    %220 = vector.broadcast %cst_120 : f32 to vector<1x64xf32>
    %221 = arith.maximumf %219, %220 : vector<1x64xf32>
    %c0_121 = arith.constant 0 : index
    %c7_122 = arith.constant 7 : index
    %c0_123 = arith.constant 0 : index
    %c0_124 = arith.constant 0 : index
    %222 = vector.load %arg6[%c0_121, %c7_122, %c0_123, %c0_124] : memref<1x8x1x64xf32, #tpu.memory_space<vmem>>, vector<1x1x1x64xf32>
    %223 = vector.shape_cast %222 : vector<1x1x1x64xf32> to vector<1x64xf32>
    %224 = vector.shape_cast %221 : vector<1x64xf32> to vector<1x1x1x64xf32>
    tpu.vector_store %arg6[%c0_121, %c7_122, %c0_123, %c0_124], %224 {strides = array<i32>} : memref<1x8x1x64xf32, #tpu.memory_space<vmem>>, vector<1x1x1x64xf32>,
    return
  }
  func.func @transform_0(%arg0: i32, %arg1: i32) -> (i32, i32, i32, i32) {
    %c0_i32 = arith.constant 0 : i32
    %c0_i32_0 = arith.constant 0 : i32
    %c0_i32_1 = arith.constant 0 : i32
    return %arg0, %c0_i32, %arg1, %c0_i32_0 : i32, i32, i32, i32
  }
  func.func @transform_1(%arg0: i32, %arg1: i32) -> (i32, i32) {
    %c0_i32 = arith.constant 0 : i32
    %c0_i32_0 = arith.constant 0 : i32
    %c0_i32_1 = arith.constant 0 : i32
    return %c0_i32, %c0_i32_0 : i32, i32
  }
  func.func @transform_2(%arg0: i32, %arg1: i32) -> (i32, i32) {
    %c0_i32 = arith.constant 0 : i32
    %c0_i32_0 = arith.constant 0 : i32
    %c0_i32_1 = arith.constant 0 : i32
    return %c0_i32, %c0_i32_0 : i32, i32
  }
  func.func @transform_3(%arg0: i32, %arg1: i32) -> i32 {
    %c0_i32 = arith.constant 0 : i32
    %c0_i32_0 = arith.constant 0 : i32
    return %c0_i32 : i32
  }
  func.func @transform_4(%arg0: i32, %arg1: i32) -> (i32, i32, i32, i32) {
    %c0_i32 = arith.constant 0 : i32
    %c0_i32_0 = arith.constant 0 : i32
    %c0_i32_1 = arith.constant 0 : i32
    return %arg0, %c0_i32, %arg1, %c0_i32_0 : i32, i32, i32, i32
  }
}

</mosaic_0001>

<bundles_post_ra>
// kernel: sample_layer_forward.1
= control target key start
LH: loop header
LB: loop body
LE: loop exit
PB: predicated region body
PF: predicated region fallthrough
CT: control target
= control target key end

     0   :  { %s2043_s0 = inlined_call_operand.vmem [shape: f32[2,4,1,256], index: 0, kind: input, shape index: {}]   ;;  %s2044_s1 = inlined_call_operand.vmem [shape: f32[256,256], index: 1, kind: input, shape index: {}]   ;;  %s2045_s2 = inlined_call_operand.vmem [shape: f32[8,4], index: 2, kind: input, shape index: {}]   ;;  %s2046_s3 = inlined_call_operand.vmem [shape: f32[8], index: 3, kind: input, shape index: {}]   ;;  %s2047_s4 = inlined_call_operand.vmem [shape: f32[2,8,1,64], index: 4, kind: output, shape index: {}]  }
   0x1   :  { %2079 = sst [smem:[#allocation29_spill]] %s2043_s0 }
   0x2   :  { %2080 = sst [smem:[#allocation30_spill]] %s2044_s1 }
   0x3   :  { %2081 = sst [smem:[#allocation31_spill]] %s2045_s2 }
   0x4   :  { %2082 = sst [smem:[#allocation32_spill]] %s2046_s3 }
   0x5   :  { %2083 = sst [smem:[#allocation33_spill]] %s2047_s4 }
   0x6   :  { %9 = vsyncpa [#allocation3], 0 }
   0x7   :  { %10 = vsyncpa [#allocation5], 0  ;;  %s1162_s15 = smov 0   ;;  %s1164_s16 = smov 0  }
   0x8   :  { %s1166_s17 = smov 0  }
   0x9 LB: > { %2084 = sst [smem:[#allocation8_spill]] %s1128_s16  ;;  %s965_s18 = sadd.s32 4294967295, %s1132_s17   ;;  %s1132_s17 = sphi %s1166_s17, %s16_s17   ;;  %s1128_s16 = sphi %s1164_s16, %s2142_s16   ;;  %s1124_s15 = sphi %s1162_s15, %s2141_s15  }
   0xa   : > { %2085 = sst [smem:[#allocation9_spill]] %s1132_s17  ;;  %s28_s19 = sadd.s32 1, %s1128_s16 }
   0xb   : > { %p30_p0 = scmp.ge.s32.totalorder %s28_s19, 2  ;;  %p967_p1 = scmp.ge.s32.totalorder %s1132_s17, 1 }
   0xc   : > { %p152_p2 = scmp.lt.s32.totalorder %s1132_s17, 3  ;;  %p1187_p4 = scmp.eq.s32.totalorder %s965_s18, 0 }
   0xd   : > { %s2144_s19 = smov (%p30_p0, %s28_s19), 0  ;;  %s2089_s2 = sld [smem:[#allocation31_spill]] }
   0xe   : > { %2086 = sst [smem:[#allocation10_spill]] %s2144_s19  ;;  %p1183_p3 = pnand %p967_p1, %p152_p2 }
   0xf   : > { %s2088_s21 = scalar_select %p1187_p4, 1, 0 }
  0x10   : > { %s2087_s20 = scalar_select %p1183_p3, 1, 0 }
  0x11   : > { %p1034_p5 = pneg %p1183_p3  ;;  %s2090_s3 = sld [smem:[#allocation32_spill]] }
  0x13   : > { %s168_s24 = sshll.u32 %s2089_s2, 4  ;;  %p1201_p6 = pnand %p1187_p4, %p1034_p5  ;;  %s169_s24 = int_to_ptr.vmem [resolvable:$true] %s168_s24 }
  0x14   : > { %s1072_s29 = scalar_lea.vmem %s169_s24, 128  ;;  %p1080_p11 = scmp.lt.s32.totalorder %s169_s24, %s169_s24 }
  0x15   : > { %p1073_p7 = scmp.ne.s32.totalorder %s169_s24, %s1072_s29  ;;  %p1074_p8 = pneg %p1201_p6 }
  0x16   : > { %p1081_p12 = scmp.lt.s32.totalorder %s1072_s29, %s1072_s29 }
  0x17   : > { %s179_s27 = sshll.u32 %s2090_s3, 4  ;;  %p1075_p9 = pnand %p1074_p8, %p1073_p7  ;;  %s180_s27 = int_to_ptr.vmem [resolvable:$true] %s179_s27 }
  0x18   : > { %p1082_p13 = por %p1081_p12, %p1080_p11 }
  0x19   : > { %p1076_p10 = pneg %p1075_p9 }
  0x1b   : > { %p1083_p0 = pnand %p1082_p13, %p1076_p10 }
  0x1d   : > { %1086 = shalt.err (!%p1083_p0)
}
  0x1e   : > { %s1134_s30 = smov [#allocation2]   ;;  %s1087_s5 = scalar_lea.vmem %s180_s27, 16 }
  0x1f   : > { %1037 = dma.vmem_to_smem (!%p1201_p6), %s169_s24, 128, %s1134_s30, [#allocation3]  }
  0x20   : > { %p1088_p1 = scmp.ne.s32.totalorder %s180_s27, %s1087_s5  ;;  %p1095_p4 = scmp.lt.s32.totalorder %s180_s27, %s180_s27 }
  0x21   : > { %p1096_p3 = scmp.lt.s32.totalorder %s1087_s5, %s1087_s5 }
  0x22   : > { %p1090_p2 = pnand %p1088_p1, %p1074_p8 }
  0x23   : > { %p1097_p7 = por %p1096_p3, %p1095_p4 }
  0x24   : > { %p1091_p5 = pneg %p1090_p2 }
  0x26   : > { %p1098_p9 = pnand %p1097_p7, %p1091_p5 }
  0x28   : > { %1101 = shalt.err (!%p1098_p9)
}
  0x29   : > { %s1135_s6 = smov [#allocation4]   ;;  %p2092_p10 = scmp.ne.s32.totalorder %s2087_s20, 0 }
  0x2a   : > { %1040 = dma.vmem_to_smem (!%p1201_p6), %s180_s27, 16, %s1135_s6, [#allocation5]  }
  0x2b   : > { %203 = sbr.rel (%p2092_p10) target bundleno = 523 (0x20b), region = 36 }
  0x30   : > { %p2093_p11 = scmp.ne.s32.totalorder %s2088_s21, 0 }
  0x32   : > { %1115 = dma.done.wait (%p2093_p11), [#allocation3], 128  }
  0x33   : > { %1117 = vsyncadd (%p2093_p11), [#allocation3], 4294967168 }
  0x34   : > { %1119 = dma.done.wait (%p2093_p11), [#allocation5], 16  }
  0x35   : > { %1121 = vsyncadd (%p2093_p11), [#allocation5], 4294967280 }
  0x36   : > { %213 = sfence }
  0x37   : > { %s2094_s1 = sld [smem:[#allocation30_spill]]  ;;  %p239_p3 = scmp.lt.s32.totalorder %s1124_s15, 1  ;;  %v320_v16 = vlaneseq  ;;  %vm716_vm0 = vcmask 516096  }
  0x38   : > { %s2096_s0 = sld [smem:[#allocation29_spill]] }
  0x39   : > { %s2146_s15 = smov (!%p239_p3, %s1124_s15), 1  ;;  %v321_v21 = vshrl.u32 %v320_v16, 7  ;;  %s1871_s18 = sld [smem:[#allocation2]] }
  0x3a   : > { %2095 = sst [smem:[#allocation11_spill]] %s2146_s15  ;;  %s2071_s5 = sshll.u32 %s2146_s15, 3 }
  0x3b   : > { %v1397_v26 = vsub.s32 0, %v321_v21  ;;  %v1399_v27 = vsub.s32 1, %v321_v21  ;;  %s1873_s20 = sld [smem:[#allocation2 + $0x80]] }
  0x3c   : > { %s1875_s21 = sld [smem:[#allocation2 + $0x100]] }
  0x3d   : > { %v1224_v0 = vld [vmem:[%s2094_s1 + $0xf8] sm:$0xff]  ;;  %v1229_v1 = vld [vmem:[%s2094_s1 + $0xf0] sm:$0xff]  ;;  %v1234_v2 = vld [vmem:[%s2094_s1 + $0xe8] sm:$0xff]  ;;  %s1877_s22 = sld [smem:[#allocation2 + $0x180]] }
  0x3e   : > { %330 = vmatprep.subr.mxu0 %v1224_v0  ;;  %425 = vmatprep.subr.mxu1 %v1224_v0  ;;  %v1241_v3 = vld [vmem:[%s2094_s1 + $0xe0] sm:$0xff]  ;;  %v1248_v4 = vld [vmem:[%s2094_s1 + $0xd8] sm:$0xff]  ;;  %v1255_v5 = vld [vmem:[%s2094_s1 + $0xd0] sm:$0xff]  ;;  %s1395_s14 = scalar_lea.vmem %s2096_s0, %s2071_s5  ;;  %s1879_s23 = sld [smem:[#allocation2 + $0x200]] }
  0x3f   : > { %331 = vmatpush1.msra.mxu0 %v1229_v1  ;;  %426 = vmatpush1.msra.mxu1 %v1229_v1  ;;  %v1262_v6 = vld [vmem:[%s2094_s1 + $0xc8] sm:$0xff]  ;;  %v1269_v7 = vld [vmem:[%s2094_s1 + $0xc0] sm:$0xff]  ;;  %v1276_v8 = vld [vmem:[%s2094_s1 + $0xb8] sm:$0xff]  ;;  %s1881_s24 = sld [smem:[#allocation2 + $0x280]] }
  0x40   : > { %332 = vmatprep.subr.mxu0 %v1234_v2  ;;  %427 = vmatprep.subr.mxu1 %v1234_v2  ;;  %v1283_v9 = vld [vmem:[%s2094_s1 + $0xb0] sm:$0xff]  ;;  %v1290_v10 = vld [vmem:[%s2094_s1 + $0xa8] sm:$0xff]  ;;  %v1297_v11 = vld [vmem:[%s2094_s1 + $0xa0] sm:$0xff]  ;;  %s1883_s25 = sld [smem:[#allocation2 + $0x300]] }
  0x41   : > { %333 = vmatpush1.msra.mxu0 %v1241_v3  ;;  %428 = vmatpush1.msra.mxu1 %v1241_v3  ;;  %v1304_v12 = vld [vmem:[%s2094_s1 + $0x98] sm:$0xff]  ;;  %v1312_v13 = vld [vmem:[%s2094_s1 + $0x90] sm:$0xff]  ;;  %v1319_v14 = vld [vmem:[%s2094_s1 + $0x88] sm:$0xff]  ;;  %s1885_s26 = sld [smem:[#allocation2 + $0x380]] }
  0x42   : > { %334 = vmatprep.subr.mxu0 %v1248_v4  ;;  %429 = vmatprep.subr.mxu1 %v1248_v4  ;;  %v1326_v15 = vld [vmem:[%s2094_s1 + $0x80] sm:$0xff]  ;;  %v1333_v17 = vld [vmem:[%s2094_s1 + $0x78] sm:$0xff]  ;;  %v1345_v18 = vld [vmem:[%s2094_s1 + $0x70] sm:$0xff]  ;;  %s1887_s27 = sld [smem:[#allocation2 + $0x1]] }
  0x43   : > { %335 = vmatpush1.msra.mxu0 %v1255_v5  ;;  %430 = vmatpush1.msra.mxu1 %v1255_v5  ;;  %v1352_v19 = vld [vmem:[%s2094_s1 + $0x68] sm:$0xff]  ;;  %v1359_v20 = vld [vmem:[%s2094_s1 + $0x60] sm:$0xff]  ;;  %v1366_v22 = vld [vmem:[%s2094_s1 + $0x58] sm:$0xff]  ;;  %s1889_s28 = sld [smem:[#allocation2 + $0x81]] }
  0x44   : > { %336 = vmatprep.subr.mxu0 %v1262_v6  ;;  %431 = vmatprep.subr.mxu1 %v1262_v6  ;;  %v1374_v23 = vld [vmem:[%s2094_s1 + $0x50] sm:$0xff]  ;;  %v1381_v24 = vld [vmem:[%s2094_s1 + $0x48] sm:$0xff]  ;;  %v1388_v25 = vld [vmem:[%s2094_s1 + $0x40] sm:$0xff]  ;;  %s1891_s29 = sld [smem:[#allocation2 + $0x101]] }
  0x45   : > { %337 = vmatpush1.msra.mxu0 %v1269_v7  ;;  %432 = vmatpush1.msra.mxu1 %v1269_v7  ;;  %v1406_v28 = vld [vmem:[%s2094_s1 + $0x38] sm:$0xff]  ;;  %v1409_v29 = vld [vmem:[%s1395_s14 + $0x4] sm:$0x3]  ;;  %v1412_v30 = vld [vmem:[%s1395_s14 + $0x6] sm:$0x3]  ;;  %s1893_s30 = sld [smem:[#allocation2 + $0x181]] }
  0x46   : > { %338 = vmatprep.subr.mxu0 %v1276_v8  ;;  %433 = vmatprep.subr.mxu1 %v1276_v8  ;;  %2097 = vst [vmem:[#allocation12_spill] sm:$0xff] %v1409_v29  ;;  %2098 = vst [vmem:[#allocation13_spill] sm:$0xff] %v1412_v30  ;;  %v1419_v31 = vld [vmem:[%s2094_s1 + $0x30] sm:$0xff]  ;;  %v1430_v34 = vld [vmem:[%s2094_s1 + $0x28] sm:$0xff]  ;;  %s1895_s6 = sld [smem:[#allocation2 + $0x201]] }
  0x47   : > { %339 = vmatpush1.msra.mxu0 %v1283_v9  ;;  %434 = vmatpush1.msra.mxu1 %v1283_v9  ;;  %v1441_v37 = vld [vmem:[%s2094_s1 + $0x20] sm:$0xff]  ;;  %v1448_v38 = vld [vmem:[%s2094_s1 + $0x18] sm:$0xff]  ;;  %v1455_v39 = vld [vmem:[%s2094_s1 + $0x10] sm:$0xff]  ;;  %s1897_s7 = sld [smem:[#allocation2 + $0x281]] }
  0x48   : > { %340 = vmatprep.subr.mxu0 %v1290_v10  ;;  %435 = vmatprep.subr.mxu1 %v1290_v10  ;;  %v1462_v40 = vld [vmem:[%s2094_s1 + $0x8] sm:$0xff]  ;;  %v1469_v41 = vld [vmem:[%s2094_s1] sm:$0xff]  ;;  %v1476_v42 = vld [vmem:[%s2094_s1 + $0x1f8] sm:$0xff]  ;;  %s1899_s8 = sld [smem:[#allocation2 + $0x301]] }
  0x49   : > { %341 = vmatpush1.msra.mxu0 %v1297_v11  ;;  %436 = vmatpush1.msra.mxu1 %v1297_v11  ;;  %v1483_v43 = vld [vmem:[%s2094_s1 + $0x1f0] sm:$0xff]  ;;  %v1490_v44 = vld [vmem:[%s2094_s1 + $0x1e8] sm:$0xff]  ;;  %v1497_v45 = vld [vmem:[%s2094_s1 + $0x1e0] sm:$0xff]  ;;  %s1901_s9 = sld [smem:[#allocation2 + $0x381]] }
  0x4a   : > { %342 = vmatprep.subr.mxu0 %v1304_v12  ;;  %437 = vmatprep.subr.mxu1 %v1304_v12  ;;  %v1504_v46 = vld [vmem:[%s2094_s1 + $0x1d8] sm:$0xff]  ;;  %v1511_v47 = vld [vmem:[%s2094_s1 + $0x1d0] sm:$0xff]  ;;  %v1518_v48 = vld [vmem:[%s2094_s1 + $0x1c8] sm:$0xff]  ;;  %s1903_s10 = sld [smem:[#allocation2 + $0x2]] }
  0x4b   : > { %343 = vmatpush1.msra.mxu0 %v1312_v13  ;;  %438 = vmatpush1.msra.mxu1 %v1312_v13  ;;  %v1525_v49 = vld [vmem:[%s2094_s1 + $0x1c0] sm:$0xff]  ;;  %v1532_v50 = vld [vmem:[%s2094_s1 + $0x1b8] sm:$0xff]  ;;  %v1539_v51 = vld [vmem:[%s2094_s1 + $0x1b0] sm:$0xff]  ;;  %s1905_s11 = sld [smem:[#allocation2 + $0x82]] }
  0x4c   : > { %344 = vmatprep.subr.mxu0 %v1319_v14  ;;  %439 = vmatprep.subr.mxu1 %v1319_v14  ;;  %v1546_v52 = vld [vmem:[%s2094_s1 + $0x1a8] sm:$0xff]  ;;  %v1553_v53 = vld [vmem:[%s2094_s1 + $0x1a0] sm:$0xff]  ;;  %v1560_v54 = vld [vmem:[%s2094_s1 + $0x198] sm:$0xff]  ;;  %s1907_s12 = sld [smem:[#allocation2 + $0x102]] }
  0x4d   : > { %345 = vmatpush1.msra.mxu0 %v1326_v15  ;;  %440 = vmatpush1.msra.mxu1 %v1326_v15  ;;  %v1567_v55 = vld [vmem:[%s2094_s1 + $0x190] sm:$0xff]  ;;  %v1574_v56 = vld [vmem:[%s2094_s1 + $0x188] sm:$0xff]  ;;  %v1581_v57 = vld [vmem:[%s2094_s1 + $0x180] sm:$0xff]  ;;  %s1909_s13 = sld [smem:[#allocation2 + $0x182]] }
  0x4e   : > { %346 = vmatprep.subr.mxu0 %v1333_v17  ;;  %441 = vmatprep.subr.mxu1 %v1333_v17  ;;  %v1588_v58 = vld [vmem:[%s2094_s1 + $0x178] sm:$0xff]  ;;  %v1595_v59 = vld [vmem:[%s2094_s1 + $0x170] sm:$0xff]  ;;  %v1602_v60 = vld [vmem:[%s2094_s1 + $0x168] sm:$0xff]  ;;  %s1913_s5 = sld [smem:[#allocation2 + $0x282]] }
  0x4f   : > { %347 = vmatpush1.msra.mxu0 %v1345_v18  ;;  %442 = vmatpush1.msra.mxu1 %v1345_v18  ;;  %v1609_v61 = vld [vmem:[%s2094_s1 + $0x160] sm:$0xff]  ;;  %v1616_v62 = vld [vmem:[%s2094_s1 + $0x158] sm:$0xff]  ;;  %v1623_v63 = vld [vmem:[%s2094_s1 + $0x150] sm:$0xff]  ;;  %s1915_s0 = sld [smem:[#allocation2 + $0x302]] }
  0x50   : > { %348 = vmatprep.subr.mxu0 %v1352_v19  ;;  %443 = vmatprep.subr.mxu1 %v1352_v19  ;;  %2099 = vst [vmem:[#allocation14_spill] sm:$0xff] %v1623_v63  ;;  %v1630_v16 = vld [vmem:[%s2094_s1 + $0x148] sm:$0xff]  ;;  %v1637_v21 = vld [vmem:[%s2094_s1 + $0x140] sm:$0xff]  ;;  %v1644_v35 = vld [vmem:[%s2094_s1 + $0x138] sm:$0xff]  ;;  %s1919_s2 = sld [smem:[#allocation2 + $0x3]] }
  0x51   : > { %349 = vmatpush1.msra.mxu0 %v1359_v20  ;;  %444 = vmatpush1.msra.mxu1 %v1359_v20  ;;  %2100 = vst [vmem:[#allocation15_spill] sm:$0xff] %v1630_v16  ;;  %2101 = vst [vmem:[#allocation16_spill] sm:$0xff] %v1637_v21  ;;  %v1651_v36 = vld [vmem:[%s2094_s1 + $0x130] sm:$0xff]  ;;  %v318_v32 = vld [vmem:[%s1395_s14] sm:$0x3]  ;;  %s1921_s3 = sld [smem:[#allocation2 + $0x83]] }
  0x52   : > { %350 = vmatprep.subr.mxu0 %v1366_v22  ;;  %445 = vmatprep.subr.mxu1 %v1366_v22  ;;  %2102 = vst [vmem:[#allocation17_spill] sm:$0xff] %v1644_v35  ;;  %2103 = vst [vmem:[#allocation18_spill] sm:$0xff] %v1651_v36  ;;  %v1659_v33 = vld [vmem:[%s2094_s1 + $0x128] sm:$0xff]  ;;  %v1666_v30 = vld [vmem:[%s2094_s1 + $0x120] sm:$0xff]  ;;  %s1923_s19 = sld [smem:[#allocation4]] }
  0x53   : > { %351 = vmatpush1.msra.mxu0 %v1374_v23  ;;  %446 = vmatpush1.msra.mxu1 %v1374_v23  ;;  %2104 = vst [vmem:[#allocation19_spill] sm:$0xff] %v1659_v33  ;;  %2105 = vst [vmem:[#allocation20_spill] sm:$0xff] %v1666_v30  ;;  %v1673_v29 = vld [vmem:[%s2094_s1 + $0x118] sm:$0xff]  ;;  %s1925_s16 = sld [smem:[#allocation4 + $0x1]] }
  0x54   : > { %352 = vmatprep.subr.mxu0 %v1381_v24  ;;  %447 = vmatprep.subr.mxu1 %v1381_v24  ;;  %2106 = vst [vmem:[#allocation21_spill] sm:$0xff] %v1673_v29  ;;  %s1927_s17 = sld [smem:[#allocation2 + $0x103]] }
  0x55   : > { %353 = vmatpush1.msra.mxu0 %v1388_v25  ;;  %448 = vmatpush1.msra.mxu1 %v1388_v25  ;;  %s1929_s4 = sld [smem:[#allocation4 + $0x2]] }
  0x56   : > { %354 = vmatprep.subr.mxu0 %v1406_v28  ;;  %449 = vmatprep.subr.mxu1 %v1406_v28  ;;  %2122 = sst [smem:[#allocation23_spill]] %s1919_s2 }
  0x57   : > { %355 = vmatpush1.msra.mxu0 %v1419_v31  ;;  %450 = vmatpush1.msra.mxu1 %v1419_v31  ;;  %2123 = sst [smem:[#allocation24_spill]] %s1921_s3 }
  0x58   : > { %356 = vmatprep.subr.mxu0 %v1430_v34  ;;  %451 = vmatprep.subr.mxu1 %v1430_v34  ;;  %s1931_s15 = sld [smem:[#allocation2 + $0x183]] }
  0x59   : > { %357 = vmatpush1.msra.mxu0 %v1441_v37  ;;  %452 = vmatpush1.msra.mxu1 %v1441_v37  ;;  %2124 = sst [smem:[#allocation25_spill]] %s1925_s16 }
  0x5a   : > { %358 = vmatprep.subr.mxu0 %v1448_v38  ;;  %453 = vmatprep.subr.mxu1 %v1448_v38  ;;  %2125 = sst [smem:[#allocation26_spill]] %s1927_s17 }
  0x5b   : > { %359 = vmatpush1.msra.mxu0 %v1455_v39  ;;  %454 = vmatpush1.msra.mxu1 %v1455_v39  ;;  %s1935_s2 = sld [smem:[#allocation2 + $0x203]] }
  0x5c   : > { %360 = vmatprep.subr.mxu0 %v1462_v40  ;;  %455 = vmatprep.subr.mxu1 %v1462_v40  ;;  %s1937_s3 = sld [smem:[#allocation4 + $0x4]] }
  0x5d   : > { %361 = vmatpush1.msra.mxu0 %v1469_v41  ;;  %456 = vmatpush1.msra.mxu1 %v1469_v41  ;;  %s1939_s16 = sld [smem:[#allocation2 + $0x283]] }
  0x5e   : > { %362 = vmatprep.subr.mxu0 %v1476_v42  ;;  %457 = vmatprep.subr.mxu1 %v1476_v42  ;;  %s1941_s17 = sld [smem:[#allocation4 + $0x5]] }
  0x5f   : > { %363 = vmatpush2.msra.mxu0 %v1483_v43  ;;  %458 = vmatpush2.msra.mxu1 %v1483_v43 }
  0x60   : > { %364 = vmatprep.subr.mxu0 %v1490_v44  ;;  %459 = vmatprep.subr.mxu1 %v1490_v44 }
  0x61   : > { %365 = vmatpush2.msra.mxu0 %v1497_v45  ;;  %460 = vmatpush2.msra.mxu1 %v1497_v45  ;;  %2126 = sst [smem:[#allocation27_spill]] %s1935_s2 }
  0x62   : > { %366 = vmatprep.subr.mxu0 %v1504_v46  ;;  %461 = vmatprep.subr.mxu1 %v1504_v46  ;;  %s1947_s2 = sld [smem:[#allocation2 + $0x303]] }
  0x63   : > { %367 = vmatpush2.msra.mxu0 %v1511_v47  ;;  %462 = vmatpush2.msra.mxu1 %v1511_v47  ;;  %2127 = sst [smem:[#allocation28_spill]] %s1939_s16 }
  0x64   : > { %368 = vmatprep.subr.mxu0 %v1518_v48  ;;  %463 = vmatprep.subr.mxu1 %v1518_v48  ;;  %s1953_s16 = sld [smem:[#allocation4 + $0x6]] }
  0x65   : > { %369 = vmatpush2.msra.mxu0 %v1525_v49  ;;  %464 = vmatpush2.msra.mxu1 %v1525_v49 }
  0x66   : > { %370 = vmatprep.subr.mxu0 %v1532_v50  ;;  %465 = vmatprep.subr.mxu1 %v1532_v50 }
  0x67   : > { %371 = vmatpush2.msra.mxu0 %v1539_v51  ;;  %466 = vmatpush2.msra.mxu1 %v1539_v51 }
  0x68   : > { %372 = vmatprep.subr.mxu0 %v1546_v52  ;;  %467 = vmatprep.subr.mxu1 %v1546_v52 }
  0x69   : > { %373 = vmatpush2.msra.mxu0 %v1553_v53  ;;  %468 = vmatpush2.msra.mxu1 %v1553_v53 }
  0x6a   : > { %374 = vmatprep.subr.mxu0 %v1560_v54  ;;  %469 = vmatprep.subr.mxu1 %v1560_v54 }
  0x6b   : > { %375 = vmatpush2.msra.mxu0 %v1567_v55  ;;  %470 = vmatpush2.msra.mxu1 %v1567_v55 }
  0x6c   : > { %376 = vmatprep.subr.mxu0 %v1574_v56  ;;  %471 = vmatprep.subr.mxu1 %v1574_v56 }
  0x6d   : > { %377 = vmatpush2.msra.mxu0 %v1581_v57  ;;  %472 = vmatpush2.msra.mxu1 %v1581_v57 }
  0x6e   : > { %378 = vmatprep.subr.mxu0 %v1588_v58  ;;  %473 = vmatprep.subr.mxu1 %v1588_v58 }
  0x6f   : > { %379 = vmatpush2.msra.mxu0 %v1595_v59  ;;  %474 = vmatpush2.msra.mxu1 %v1595_v59 }
  0x70   : > { %380 = vmatprep.subr.mxu0 %v1602_v60  ;;  %475 = vmatprep.subr.mxu1 %v1602_v60 }
  0x71   : > { %381 = vmatpush2.msra.mxu0 %v1609_v61  ;;  %476 = vmatpush2.msra.mxu1 %v1609_v61 }
  0x72   : > { %382 = vmatprep.subr.mxu0 %v1616_v62  ;;  %477 = vmatprep.subr.mxu1 %v1616_v62 }
  0x73   : > { %383 = vmatpush2.msra.mxu0 %v1623_v63  ;;  %478 = vmatpush2.msra.mxu1 %v1623_v63  ;;  %v323_v63 = vrot.slane %v318_v32, %v1397_v26 }
  0x74   : > { %384 = vmatprep.subr.mxu0 %v1630_v16  ;;  %479 = vmatprep.subr.mxu1 %v1630_v16  ;;  %v976_v16 = vld [vmem:[%s1395_s14 + $0x2] sm:$0x3]  ;;  %s1136_s14 = smov 64  }
  0x75   : > { %385 = vmatpush2.msra.mxu0 %v1637_v21  ;;  %480 = vmatpush2.msra.mxu1 %v1637_v21  ;;  %v327_v21 = vrot.slane %v318_v32, %v1399_v27  ;;  %v782_v32 = vstv %s1879_s23  ;;  %s2130_s23 = sld [smem:[#allocation24_spill]] }
  0x76   : > { %386 = vmatprep.subr.mxu0 %v1644_v35  ;;  %481 = vmatprep.subr.mxu1 %v1644_v35  ;;  %v1681_v35 = vld [vmem:[%s2094_s1 + $0x110] sm:$0xff] }
  0x77   : > { %387 = vmatpush2.msra.mxu0 %v1651_v36  ;;  %482 = vmatpush2.msra.mxu1 %v1651_v36  ;;  %v1688_v36 = vld [vmem:[%s2094_s1 + $0x108] sm:$0xff] }
  0x78   : > { %388 = vmatprep.subr.mxu0 %v1659_v33  ;;  %483 = vmatprep.subr.mxu1 %v1659_v33  ;;  %v1696_v33 = vld [vmem:[%s2094_s1 + $0x100] sm:$0xff]  ;;  %s1917_s1 = sld [smem:[#allocation2 + $0x382]] }
  0x79   : > { %389 = vmatpush2.msra.mxu0 %v1666_v30  ;;  %484 = vmatpush2.msra.mxu1 %v1666_v30  ;;  %v422_v30 = vrot.slane %v976_v16, %v1399_v27 }
  0x7a   : > { %390 = vmatprep.subr.mxu0 %v1673_v29  ;;  %485 = vmatprep.subr.mxu1 %v1673_v29  ;;  %v418_v29 = vrot.slane %v976_v16, %v1397_v26  ;;  %v755_v16 = vstv %s1929_s4 }
  0x7b   : > { %391 = vmatpush2.msra.mxu0 %v1681_v35  ;;  %394 = vmatprep.mubr.f32.mxu0 %v327_v21 }
  0x7c   : > { %392 = vmatprep.subr.mxu0 %v1688_v36  ;;  %486 = vmatpush2.msra.mxu1 %v1681_v35 }
  0x7d   : > { %393 = vmatpush2.msra.mxu0 %v1696_v33  ;;  %487 = vmatprep.subr.mxu1 %v1688_v36 }
  0x7e   : > { %395 = vmatmul.mubr.f32.vlgmr.msra.gmra.mxu0 %v323_v63  ;;  %520 = vmatprep.subr.mxu0 %v1224_v0  ;;  %2121 = sst [smem:[#allocation22_spill]] %s1917_s1 }
  0x7f   : > { %488 = vmatpush2.msra.mxu1 %v1696_v33  ;;  %521 = vmatpush1.msra.mxu0 %v1229_v1  ;;  %s1933_s1 = sld [smem:[#allocation4 + $0x3]] }
  0x80   : > { %489 = vmatprep.mubr.f32.mxu1 %v422_v30  ;;  %522 = vmatprep.subr.mxu0 %v1234_v2  ;;  %v740_v30 = vstv %s1875_s21  ;;  %s2129_s21 = sld [smem:[#allocation23_spill]] }
  0x81   : > { %615 = vmatprep.subr.mxu1 %v1224_v0  ;;  %490 = vmatmul.mubr.f32.vlgmr.msra.gmra.mxu1 %v418_v29  ;;  %v2107_v0 = vld [vmem:[#allocation14_spill] sm:$0xff] }
  0x82   : > { %523 = vmatpush1.msra.mxu0 %v1241_v3  ;;  %616 = vmatpush1.msra.mxu1 %v1229_v1  ;;  %v2108_v1 = vld [vmem:[#allocation15_spill] sm:$0xff] }
  0x83   : > { %524 = vmatprep.subr.mxu0 %v1248_v4  ;;  %617 = vmatprep.subr.mxu1 %v1234_v2  ;;  %v2109_v2 = vld [vmem:[#allocation16_spill] sm:$0xff] }
  0x84   : > { %525 = vmatpush1.msra.mxu0 %v1255_v5  ;;  %618 = vmatpush1.msra.mxu1 %v1241_v3  ;;  %v2110_v3 = vld [vmem:[#allocation17_spill] sm:$0xff] }
  0x85   : > { %526 = vmatprep.subr.mxu0 %v1262_v6  ;;  %619 = vmatprep.subr.mxu1 %v1248_v4  ;;  %v2111_v4 = vld [vmem:[#allocation18_spill] sm:$0xff] }
  0x86   : > { %527 = vmatpush1.msra.mxu0 %v1269_v7  ;;  %620 = vmatpush1.msra.mxu1 %v1255_v5  ;;  %v2112_v5 = vld [vmem:[#allocation19_spill] sm:$0xff] }
  0x87   : > { %528 = vmatprep.subr.mxu0 %v1276_v8  ;;  %621 = vmatprep.subr.mxu1 %v1262_v6  ;;  %v2113_v6 = vld [vmem:[#allocation20_spill] sm:$0xff] }
  0x88   : > { %529 = vmatpush1.msra.mxu0 %v1283_v9  ;;  %622 = vmatpush1.msra.mxu1 %v1269_v7  ;;  %v2114_v7 = vld [vmem:[#allocation21_spill] sm:$0xff] }
  0x89   : > { %530 = vmatprep.subr.mxu0 %v1290_v10  ;;  %623 = vmatprep.subr.mxu1 %v1276_v8  ;;  %v2115_v8 = vld [vmem:[#allocation12_spill] sm:$0xff] }
  0x8a   : > { %531 = vmatpush1.msra.mxu0 %v1297_v11  ;;  %624 = vmatpush1.msra.mxu1 %v1283_v9  ;;  %v2116_v9 = vrot.slane %v2115_v8, %v1399_v27 }
  0x8b   : > { %532 = vmatprep.subr.mxu0 %v1304_v12  ;;  %625 = vmatprep.subr.mxu1 %v1290_v10  ;;  %v2117_v10 = vrot.slane %v2115_v8, %v1397_v26 }
  0x8c   : > { %533 = vmatpush1.msra.mxu0 %v1312_v13  ;;  %626 = vmatpush1.msra.mxu1 %v1297_v11  ;;  %v2118_v11 = vld [vmem:[#allocation13_spill] sm:$0xff] }
  0x8d   : > { %534 = vmatprep.subr.mxu0 %v1319_v14  ;;  %627 = vmatprep.subr.mxu1 %v1304_v12  ;;  %v2119_v12 = vrot.slane %v2118_v11, %v1399_v27  ;;  %v698_v27 = vstv %s1871_s18  ;;  %s1959_s18 = sld [smem:[#allocation2 + $0x383]] }
  0x8e   : > { %535 = vmatpush1.msra.mxu0 %v1326_v15  ;;  %628 = vmatpush1.msra.mxu1 %v1312_v13  ;;  %v2120_v13 = vrot.slane %v2118_v11, %v1397_v26 }
  0x8f   : > { %536 = vmatprep.subr.mxu0 %v1333_v17  ;;  %629 = vmatprep.subr.mxu1 %v1319_v14 }
  0x90   : > { %537 = vmatpush1.msra.mxu0 %v1345_v18  ;;  %630 = vmatpush1.msra.mxu1 %v1326_v15 }
  0x91   : > { %538 = vmatprep.subr.mxu0 %v1352_v19  ;;  %631 = vmatprep.subr.mxu1 %v1333_v17 }
  0x92   : > { %539 = vmatpush1.msra.mxu0 %v1359_v20  ;;  %632 = vmatpush1.msra.mxu1 %v1345_v18 }
  0x93   : > { %540 = vmatprep.subr.mxu0 %v1366_v22  ;;  %633 = vmatprep.subr.mxu1 %v1352_v19 }
  0x94   : > { %541 = vmatpush1.msra.mxu0 %v1374_v23  ;;  %634 = vmatpush1.msra.mxu1 %v1359_v20 }
  0x95   : > { %542 = vmatprep.subr.mxu0 %v1381_v24  ;;  %635 = vmatprep.subr.mxu1 %v1366_v22 }
  0x96   : > { %543 = vmatpush1.msra.mxu0 %v1388_v25  ;;  %636 = vmatpush1.msra.mxu1 %v1374_v23 }
  0x97   : > { %544 = vmatprep.subr.mxu0 %v1406_v28  ;;  %637 = vmatprep.subr.mxu1 %v1381_v24 }
  0x98   : > { %545 = vmatpush1.msra.mxu0 %v1419_v31  ;;  %638 = vmatpush1.msra.mxu1 %v1388_v25 }
  0x99   : > { %546 = vmatprep.subr.mxu0 %v1430_v34  ;;  %639 = vmatprep.subr.mxu1 %v1406_v28  ;;  %v719_v28 = vstv %s1873_s20  ;;  %s2128_s20 = sld [smem:[#allocation22_spill]] }
  0x9a   : > { %547 = vmatpush1.msra.mxu0 %v1441_v37  ;;  %640 = vmatpush1.msra.mxu1 %v1419_v31  ;;  %v761_v31 = vstv %s1877_s22  ;;  %s1965_s22 = sld [smem:[#allocation4 + $0x7]] }
  0x9b   : > { %548 = vmatprep.subr.mxu0 %v1448_v38  ;;  %641 = vmatprep.subr.mxu1 %v1430_v34  ;;  %v824_v34 = vstv %s1883_s25  ;;  %s2132_s25 = sld [smem:[#allocation26_spill]] }
  0x9c   : > { %549 = vmatpush1.msra.mxu0 %v1455_v39  ;;  %642 = vmatpush1.msra.mxu1 %v1441_v37  ;;  %v722_v37 = vstv %s1889_s28  ;;  %s2137_s28 = sld [smem:[#allocation33_spill]] }
  0x9d   : > { %550 = vmatprep.subr.mxu0 %v1462_v40  ;;  %643 = vmatprep.subr.mxu1 %v1448_v38  ;;  %v743_v38 = vstv %s1891_s29 }
  0x9e   : > { %551 = vmatpush1.msra.mxu0 %v1469_v41  ;;  %644 = vmatpush1.msra.mxu1 %v1455_v39  ;;  %v764_v39 = vstv %s1893_s30 }
  0x9f   : > { %552 = vmatprep.subr.mxu0 %v1476_v42  ;;  %645 = vmatprep.subr.mxu1 %v1462_v40  ;;  %v785_v40 = vstv %s1895_s6 }
  0xa0   : > { %553 = vmatpush2.msra.mxu0 %v1483_v43  ;;  %646 = vmatpush1.msra.mxu1 %v1469_v41  ;;  %v806_v41 = vstv %s1897_s7 }
  0xa1   : > { %554 = vmatprep.subr.mxu0 %v1490_v44  ;;  %647 = vmatprep.subr.mxu1 %v1476_v42  ;;  %v751_v63 = vstv %s2132_s25 }
  0xa2   : > { %555 = vmatpush2.msra.mxu0 %v1497_v45  ;;  %648 = vmatpush2.msra.mxu1 %v1483_v43 }
  0xa3   : > { %556 = vmatprep.subr.mxu0 %v1504_v46  ;;  %649 = vmatprep.subr.mxu1 %v1490_v44 }
  0xa4   : > { %557 = vmatpush2.msra.mxu0 %v1511_v47  ;;  %650 = vmatpush2.msra.mxu1 %v1497_v45  ;;  %v827_v45 = vstv %s1899_s8 }
  0xa5   : > { %558 = vmatprep.subr.mxu0 %v1518_v48  ;;  %651 = vmatprep.subr.mxu1 %v1504_v46  ;;  %v848_v46 = vstv %s1901_s9 }
  0xa6   : > { %559 = vmatpush2.msra.mxu0 %v1525_v49  ;;  %652 = vmatpush2.msra.mxu1 %v1511_v47 }
  0xa7   : > { %560 = vmatprep.subr.mxu0 %v1532_v50  ;;  %653 = vmatprep.subr.mxu1 %v1518_v48  ;;  %v705_v48 = vstv %s1903_s10 }
  0xa8   : > { %561 = vmatpush2.msra.mxu0 %v1539_v51  ;;  %654 = vmatpush2.msra.mxu1 %v1525_v49  ;;  %v726_v49 = vstv %s1905_s11 }
  0xa9   : > { %562 = vmatprep.subr.mxu0 %v1546_v52  ;;  %655 = vmatprep.subr.mxu1 %v1532_v50  ;;  %v747_v50 = vstv %s1907_s12 }
  0xaa   : > { %563 = vmatpush2.msra.mxu0 %v1553_v53  ;;  %656 = vmatpush2.msra.mxu1 %v1539_v51  ;;  %v768_v51 = vstv %s1909_s13 }
  0xab   : > { %564 = vmatprep.subr.mxu0 %v1560_v54  ;;  %657 = vmatprep.subr.mxu1 %v1546_v52 }
  0xac   : > { %565 = vmatpush2.msra.mxu0 %v1567_v55  ;;  %658 = vmatpush2.msra.mxu1 %v1553_v53  ;;  %v810_v53 = vstv %s1913_s5 }
  0xad   : > { %566 = vmatprep.subr.mxu0 %v1574_v56  ;;  %659 = vmatprep.subr.mxu1 %v1560_v54  ;;  %v831_v54 = vstv %s1915_s0  ;;  %s2135_s0 = sld [smem:[#allocation11_spill]] }
  0xae   : > { %567 = vmatpush2.msra.mxu0 %v1581_v57  ;;  %660 = vmatpush2.msra.mxu1 %v1567_v55  ;;  %v852_v55 = vstv %s2128_s20 }
  0xaf   : > { %568 = vmatprep.subr.mxu0 %v1588_v58  ;;  %661 = vmatprep.subr.mxu1 %v1574_v56  ;;  %v709_v56 = vstv %s2129_s21 }
  0xb0   : > { %569 = vmatpush2.msra.mxu0 %v1595_v59  ;;  %662 = vmatpush2.msra.mxu1 %v1581_v57  ;;  %v713_v57 = vstv %s1923_s19 }
  0xb1   : > { %570 = vmatprep.subr.mxu0 %v1602_v60  ;;  %663 = vmatprep.subr.mxu1 %v1588_v58  ;;  %v730_v58 = vstv %s2130_s23 }
  0xb2   : > { %571 = vmatpush2.msra.mxu0 %v1609_v61  ;;  %664 = vmatpush2.msra.mxu1 %v1595_v59 }
  0xb3   : > { %572 = vmatprep.subr.mxu0 %v1616_v62  ;;  %665 = vmatprep.subr.mxu1 %v1602_v60 }
  0xb4   : > { %573 = vmatpush2.msra.mxu0 %v2107_v0  ;;  %666 = vmatpush2.msra.mxu1 %v1609_v61 }
  0xb5   : > { %574 = vmatprep.subr.mxu0 %v2108_v1  ;;  %667 = vmatprep.subr.mxu1 %v1616_v62 }
  0xb6   : > { %575 = vmatpush2.msra.mxu0 %v2109_v2  ;;  %668 = vmatpush2.msra.mxu1 %v2107_v0  ;;  %v772_v0 = vstv %s1931_s15 }
  0xb7   : > { %576 = vmatprep.subr.mxu0 %v2110_v3  ;;  %669 = vmatprep.subr.mxu1 %v2108_v1  ;;  %v776_v1 = vstv %s1933_s1 }
  0xb8   : > { %577 = vmatpush2.msra.mxu0 %v2111_v4  ;;  %670 = vmatpush2.msra.mxu1 %v2109_v2 }
  0xb9   : > { %578 = vmatprep.subr.mxu0 %v2112_v5  ;;  %671 = vmatprep.subr.mxu1 %v2110_v3  ;;  %v797_v3 = vstv %s1937_s3 }
  0xba   : > { %579 = vmatpush2.msra.mxu0 %v2113_v6  ;;  %672 = vmatpush2.msra.mxu1 %v2111_v4 }
  0xbb   : > { %580 = vmatprep.subr.mxu0 %v2114_v7  ;;  %673 = vmatprep.subr.mxu1 %v2112_v5  ;;  %v818_v5 = vstv %s1941_s17 }
  0xbc   : > { %581 = vmatpush2.msra.mxu0 %v1681_v35  ;;  %674 = vmatpush2.msra.mxu1 %v2113_v6  ;;  %v835_v6 = vstv %s1947_s2  ;;  %s2136_s2 = sshll.u32 %s2135_s0, 3 }
  0xbd   : > { %582 = vmatprep.subr.mxu0 %v1688_v36  ;;  %675 = vmatprep.subr.mxu1 %v2114_v7  ;;  %s253_s29 = scalar_lea.vmem %s2137_s28, %s2136_s2 }
  0xbe   : > { %583 = vmatpush2.msra.mxu0 %v1696_v33  ;;  %584 = vmatprep.mubr.f32.mxu0 %v2116_v9  ;;  %v856_v9 = vstv %s1959_s18 }
  0xbf   : > { %676 = vmatpush2.msra.mxu1 %v1681_v35  ;;  %585 = vmatmul.mubr.f32.vlgmr.msra.gmra.mxu0 %v2117_v10  ;;  %v845_v35 = vstv %s1885_s26  ;;  %s2133_s26 = sld [smem:[#allocation27_spill]] }
  0xc0   : > { %677 = vmatprep.subr.mxu1 %v1688_v36  ;;  %679 = vmatprep.mubr.f32.mxu1 %v2119_v12  ;;  %v701_v36 = vstv %s1887_s27  ;;  %s2134_s27 = sld [smem:[#allocation28_spill]] }
  0xc1   : > { %678 = vmatpush2.msra.mxu1 %v1696_v33  ;;  %v803_v33 = vstv %s1881_s24  ;;  %s2131_s24 = sld [smem:[#allocation25_spill]] }
  0xc2   : > { %680 = vmatmul.mubr.f32.vlgmr.msra.gmra.mxu1 %v2120_v13 }
  0xc5   : > { %v793_v2 = vstv %s2133_s26 }
  0xc6   : > { %v814_v4 = vstv %s2134_s27 }
  0xc7   : > { %v734_v59 = vstv %s2131_s24 }
 0x13e   : > { %v1847_v14 = vpop.f32.mrf.mxu0 }
 0x13f   : > { %402 = vrot.lane.b32.xlu0 %v1847_v14, %s1136_s14 }
 0x140   : > { %v1850_v15 = vpop.f32.mrf.mxu0 }
 0x141   : > { %v1852_v17 = vpop.f32.mrf.mxu1  ;;  %408 = vrot.lane.b32.xlu1 %v1850_v15, %s1136_s14 }
 0x143   : > { %497 = vrot.lane.b32.xlu0 %v1852_v17, %s1136_s14  ;;  %v1856_v18 = vpop.f32.mrf.mxu1 }
 0x147   : > { %503 = vrot.lane.b32.xlu0 %v1856_v18, %s1136_s14 }
 0x17f   : > { %v1859_v19 = vpop.f32.mrf.mxu0 }
 0x180   : > { %592 = vrot.lane.b32.xlu1 %v1859_v19, %s1136_s14 }
 0x181   : > { %v1862_v20 = vpop.f32.mrf.mxu0 }
 0x182   : > { %598 = vrot.lane.b32.xlu0 %v1862_v20, %s1136_s14  ;;  %v1865_v22 = vpop.f32.mrf.mxu1 }
 0x184   : > { %687 = vrot.lane.b32.xlu1 %v1865_v22, %s1136_s14  ;;  %v1868_v23 = vpop.f32.mrf.mxu1 }
 0x188   : > { %693 = vrot.lane.b32.xlu1 %v1868_v23, %s1136_s14  ;;  %s1911_s14 = sld [smem:[#allocation2 + $0x202]] }
 0x18e   : > { %v789_v52 = vstv %s1911_s14 }
 0x1b1   : > { %v403_v24 = vpop.permute.xlu0 %402 }
 0x1b2   : > { %v405_v26 = vmax.f32 %v1847_v14, %v403_v24 }
 0x1b3   : > { %v409_v42 = vpop.permute.xlu1 %408 }
 0x1b4   : > { %v406_v43 = vmax.f32 %v405_v26, %v1850_v15 }
 0x1b5   : > { %v498_v25 = vpop.permute.xlu0 %497 }
 0x1b6   : > { %v500_v29 = vmax.f32 %v1852_v17, %v498_v25  ;;  %v411_v60 = vmax.f32 %v406_v43, %v409_v42 }
 0x1b8   : > { %v501_v44 = vmax.f32 %v500_v29, %v1856_v18  ;;  %v699_v11 = vmul.f32 %v698_v27, %v411_v60  ;;  %v720_v12 = vmul.f32 %v719_v28, %v411_v60  ;;  %v741_v13 = vmul.f32 %v740_v30, %v411_v60 }
 0x1b9   : > { %v504_v47 = vpop.permute.xlu0 %503  ;;  %v762_v18 = vmul.f32 %v761_v31, %v411_v60  ;;  %v804_v26 = vmul.f32 %v803_v33, %v411_v60  ;;  %v825_v29 = vmul.f32 %v824_v34, %v411_v60  ;;  %v846_v42 = vmul.f32 %v845_v35, %v411_v60 }
 0x1ba   : > { %v506_v61 = vmax.f32 %v501_v44, %v504_v47 }
 0x1bc   : > { %v702_v14 = vmul.f32 %v701_v36, %v506_v61  ;;  %v723_v24 = vmul.f32 %v722_v37, %v506_v61  ;;  %v744_v43 = vmul.f32 %v743_v38, %v506_v61  ;;  %v765_v44 = vmul.f32 %v764_v39, %v506_v61 }
 0x1bd   : > { %v786_v47 = vmul.f32 %v785_v40, %v506_v61  ;;  %v828_v27 = vmul.f32 %v827_v45, %v506_v61  ;;  %v849_v28 = vmul.f32 %v848_v46, %v506_v61 }
 0x1be   : > { %v724_v36 = vadd.f32 %v723_v24, %v720_v12  ;;  %v745_v35 = vadd.f32 %v744_v43, %v741_v13  ;;  %v766_v38 = vadd.f32 %v765_v44, %v762_v18 }
 0x1bf   : > { %v850_v45 = vadd.f32 %v849_v28, %v846_v42 }
 0x1f2   : > { %v593_v62 = vpop.permute.xlu1 %592 }
 0x1f3   : > { %v595_v21 = vmax.f32 %v1859_v19, %v593_v62  ;;  %v783_v19 = vmul.f32 %v782_v32, %v411_v60 }
 0x1f4   : > { %v599_v15 = vpop.permute.xlu0 %598 }
 0x1f5   : > { %v596_v7 = vmax.f32 %v595_v21, %v1862_v20  ;;  %v807_v20 = vmul.f32 %v806_v41, %v506_v61  ;;  %v703_v21 = vadd.f32 %v702_v14, %v699_v11  ;;  %v787_v39 = vadd.f32 %v786_v47, %v783_v19 }
 0x1f6   : > { %v688_v17 = vpop.permute.xlu1 %687  ;;  %v829_v41 = vadd.f32 %v828_v27, %v825_v29  ;;  %v2139_v29 = vstv %s1965_s22 }
 0x1f7   : > { %v601_v25 = vmax.f32 %v596_v7, %v599_v15  ;;  %v690_v62 = vmax.f32 %v1865_v22, %v688_v17  ;;  %v808_v40 = vadd.f32 %v807_v20, %v804_v26 }
 0x1f9   : > { %v706_v30 = vmul.f32 %v705_v48, %v601_v25  ;;  %v727_v10 = vmul.f32 %v726_v49, %v601_v25  ;;  %v748_v8 = vmul.f32 %v747_v50, %v601_v25  ;;  %v769_v31 = vmul.f32 %v768_v51, %v601_v25 }
 0x1fa   : > { %v790_v32 = vmul.f32 %v789_v52, %v601_v25  ;;  %v811_v37 = vmul.f32 %v810_v53, %v601_v25  ;;  %v832_v7 = vmul.f32 %v831_v54, %v601_v25  ;;  %v853_v33 = vmul.f32 %v852_v55, %v601_v25  ;;  %v694_v34 = vpop.permute.xlu1 %693 }
 0x1fb   : > { %v691_v22 = vmax.f32 %v690_v62, %v1868_v23  ;;  %v707_v46 = vadd.f32 %v706_v30, %v703_v21  ;;  %v728_v48 = vadd.f32 %v727_v10, %v724_v36  ;;  %v749_v49 = vadd.f32 %v748_v8, %v745_v35 }
 0x1fc   : > { %v770_v50 = vadd.f32 %v769_v31, %v766_v38  ;;  %v791_v52 = vadd.f32 %v790_v32, %v787_v39  ;;  %v812_v53 = vadd.f32 %v811_v37, %v808_v40  ;;  %v833_v54 = vadd.f32 %v832_v7, %v829_v41 }
 0x1fd   : > { %v696_v51 = vmax.f32 %v691_v22, %v694_v34  ;;  %v854_v55 = vadd.f32 %v853_v33, %v850_v45  ;;  %v2138_v25 = vstv %s1953_s16 }
 0x1ff   : > { %v710_v60 = vmul.f32 %v709_v56, %v696_v51  ;;  %v731_v61 = vmul.f32 %v730_v58, %v696_v51  ;;  %v752_v23 = vmul.f32 %v751_v63, %v696_v51  ;;  %v773_v11 = vmul.f32 %v772_v0, %v696_v51 }
 0x200   : > { %v794_v12 = vmul.f32 %v793_v2, %v696_v51  ;;  %v815_v8 = vmul.f32 %v814_v4, %v696_v51  ;;  %v836_v10 = vmul.f32 %v835_v6, %v696_v51  ;;  %v857_v13 = vmul.f32 %v856_v9, %v696_v51 }
 0x201   : > { %v711_v14 = vadd.f32 %v710_v60, %v707_v46  ;;  %v732_v56 = vadd.f32 %v731_v61, %v728_v48  ;;  %v753_v15 = vadd.f32 %v752_v23, %v749_v49  ;;  %v774_v17 = vadd.f32 %v773_v11, %v770_v50 }
 0x202   : > { %v795_v58 = vadd.f32 %v794_v12, %v791_v52  ;;  %v816_v18 = vadd.f32 %v815_v8, %v812_v53  ;;  %v837_v19 = vadd.f32 %v836_v10, %v833_v54  ;;  %v858_v63 = vadd.f32 %v857_v13, %v854_v55 }
 0x203   : > { %v714_v0 = vadd.f32 %v713_v57, %v711_v14  ;;  %v735_v2 = vadd.f32 %v734_v59, %v732_v56  ;;  %v756_v4 = vadd.f32 %v755_v16, %v753_v15  ;;  %v777_v6 = vadd.f32 %v776_v1, %v774_v17 }
 0x204   : > { %v798_v9 = vadd.f32 %v797_v3, %v795_v58  ;;  %v819_v24 = vadd.f32 %v818_v5, %v816_v18  ;;  %v840_v26 = vadd.f32 %v2138_v25, %v837_v19  ;;  %v861_v42 = vadd.f32 %v2139_v29, %v858_v63 }
 0x205   : > { %v715_v57 = vmax.f32 %v714_v0, 0.0  ;;  %v736_v43 = vmax.f32 %v735_v2, 0.0  ;;  %v757_v59 = vmax.f32 %v756_v4, 0.0  ;;  %v778_v44 = vmax.f32 %v777_v6, 0.0 }
 0x206   : > { %v799_v16 = vmax.f32 %v798_v9, 0.0  ;;  %v820_v47 = vmax.f32 %v819_v24, 0.0  ;;  %v841_v1 = vmax.f32 %v840_v26, 0.0  ;;  %v862_v20 = vmax.f32 %v861_v42, 0.0 }
 0x207   : > { %717 = vst.msk [vmem:[%s253_s29] sm:$0x1] %vm716_vm0, %v715_v57  ;;  %987 = vst.msk [vmem:[%s253_s29 + $0x1] sm:$0x1] %vm716_vm0, %v736_v43 }
 0x208   : > { %993 = vst.msk [vmem:[%s253_s29 + $0x2] sm:$0x1] %vm716_vm0, %v757_v59  ;;  %999 = vst.msk [vmem:[%s253_s29 + $0x3] sm:$0x1] %vm716_vm0, %v778_v44 }
 0x209   : > { %1005 = vst.msk [vmem:[%s253_s29 + $0x4] sm:$0x1] %vm716_vm0, %v799_v16  ;;  %1011 = vst.msk [vmem:[%s253_s29 + $0x5] sm:$0x1] %vm716_vm0, %v820_v47 }
 0x20a   : > { %1017 = vst.msk [vmem:[%s253_s29 + $0x6] sm:$0x1] %vm716_vm0, %v841_v1  ;;  %1023 = vst.msk [vmem:[%s253_s29 + $0x7] sm:$0x1] %vm716_vm0, %v862_v20 }
 0x20b PF: > { %s2140_s1 = sld [smem:[#allocation9_spill]] }
 0x20c   : > { %s2141_s15 = sld [smem:[#allocation8_spill]] }
 0x20d   : > { %s2142_s16 = sld [smem:[#allocation10_spill]] }
 0x211   : > { %s16_s17 = sadd.s32 1, %s2140_s1  }
 0x212   : > { %p13_p4 = scmp.ge.s32.totalorder %s16_s17, 4  }
 0x214   :  { %15 = sbr.rel (!%p13_p4) target bundleno = 9 (0x9), region = 85 }
 0x219   :  { %890 = vsyncpa [#allocation3], 1 }
 0x21a   :  { %892 = vsyncpa [#allocation3 + $0x1], 1 }
 0x21b   :  { %893 = vsyncpa [#allocation5], 1 }

</bundles_post_ra>
